<compile_context>
chip_gen: v7x
topology: tpu7x:2x2x1
jax: 0.10.0
libtpu: 0.0.40
codegen_flags: <defaults>
</compile_context>

<pallas_src>
import functools

import jax
import jax.numpy as jnp
from jax.experimental import pallas as pl
from jax.experimental.pallas import tpu as pltpu


def _lpwff_kernel(x_ref, w1_ref, b1_ref, w2_ref, b2_ref, g_ref, beta_ref, o_ref,
                  *, eps):
    """One grid step: a (tile_n, D) row slab through fc1 -> relu -> fused
    (block-diagonal) fc2 -> residual -> LayerNorm."""
    x = x_ref[...]                                              # (tn, D)
    x_f32 = x.astype(jnp.float32)

    # ---- fc1 (bf16 MXU operands, f32 accumulation) + ReLU -------------------
    h = jnp.dot(x.astype(jnp.bfloat16), w1_ref[...],
                preferred_element_type=jnp.float32)             # (tn, F) f32
    h = jnp.maximum(h + b1_ref[...].astype(jnp.float32), 0.0)
    # TODO(synk): training-mode dropout_2 omitted (eval-mode forward; identity)

    # ---- grouped fc2 folded into one block-diagonal matmul ------------------
    y = jnp.dot(h.astype(jnp.bfloat16), w2_ref[...],
                preferred_element_type=jnp.float32)             # (tn, D) f32
    y = y + b2_ref[...].astype(jnp.float32)
    # TODO(synk): training-mode dropout omitted (eval-mode forward; identity)

    # ---- residual + LayerNorm (f32 VPU epilogue) -----------------------------
    z = x_f32 + y
    mean = jnp.mean(z, axis=-1, keepdims=True)
    zc = z - mean
    var = jnp.mean(zc * zc, axis=-1, keepdims=True)
    inv = jax.lax.rsqrt(var + jnp.float32(eps))
    out = zc * inv * g_ref[...].astype(jnp.float32) + beta_ref[...].astype(jnp.float32)
    o_ref[...] = out.astype(o_ref.dtype)


def _pick_tile_n(n):
    """Row tile: never below 128 rows (small N gets padded up, not the tile
    shrunk); prefer 256/512 when they divide N or the problem is large enough
    to amortize the padding (bigger tiles amortize the ~0.35us/step overhead
    and keep the MXU's M dimension fed)."""
    for cand in (512, 256):
        if n % cand == 0 or n >= 8 * cand:
            return cand
    return 128


def lpwff_forward(x, w1, b1, w2, b2, gamma, beta, *, groups=2, eps=1e-5,
                  tile_n=None):
    """x: (B, L, D).  w1: (D, d_ff), b1: (d_ff,), w2: (d_ff//groups, D//groups),
    b2: (D//groups,), gamma/beta: (D,).  Returns (B, L, D)."""
    B, L, D = x.shape
    d_ff = w1.shape[1]
    fg, dg = d_ff // groups, D // groups
    assert w1.shape == (D, d_ff)
    assert w2.shape == (fg, dg)
    assert fg * groups == d_ff and dg * groups == D

    # ---- fold the grouped fc2 into one block-diagonal (d_ff, D) weight ------
    w2_full = jnp.zeros((d_ff, D), dtype=w2.dtype)
    for g in range(groups):
        w2_full = w2_full.at[g * fg:(g + 1) * fg, g * dg:(g + 1) * dg].set(w2)

    # bf16 weights for the MXU (accumulation stays f32 in the kernel).
    w1_bf = w1.astype(jnp.bfloat16)
    w2_bf = w2_full.astype(jnp.bfloat16)

    b1_2 = b1.reshape(1, d_ff).astype(jnp.float32)
    b2_2 = jnp.tile(b2, groups).reshape(1, D).astype(jnp.float32)
    gamma_2 = gamma.reshape(1, D).astype(jnp.float32)
    beta_2 = beta.reshape(1, D).astype(jnp.float32)

    # ---- flatten rows, pad to a multiple of the row tile ---------------------
    N = B * L
    x2 = x.reshape(N, D)
    if tile_n is None:
        tile_n = _pick_tile_n(N)
    n_pad = -(-N // tile_n) * tile_n
    if n_pad != N:
        x2 = jnp.pad(x2, ((0, n_pad - N), (0, 0)))
    grid = (n_pad // tile_n,)

    # ---- VMEM budget & cost estimate -----------------------------------------
    xbytes = x2.dtype.itemsize
    weight_bytes = 2 * (w1_bf.size + w2_bf.size)                 # bf16, resident
    tile_bytes = 2 * tile_n * D * 2 * xbytes                     # x/out, 2-buffered
    interm_bytes = tile_n * d_ff * (4 + 2) + 3 * tile_n * D * 4  # h f32+bf16, y/z
    vmem_limit = int(min(64 << 20,
                         max(2 * weight_bytes + tile_bytes + interm_bytes + (4 << 20),
                             16 << 20)))
    cost = pl.CostEstimate(
        flops=4 * n_pad * D * d_ff,                              # fc1 + fused fc2
        transcendentals=n_pad,                                   # rsqrt per row
        bytes_accessed=2 * n_pad * D * xbytes + weight_bytes)

    kernel = functools.partial(_lpwff_kernel, eps=eps)
    out_shape = jax.ShapeDtypeStruct((n_pad, D), x.dtype)

    def build_call(single_buffer_weights):
        def resident(shape):
            kwargs = {}
            if single_buffer_weights:
                # Constant index_map -> block never changes; one buffer suffices.
                kwargs["pipeline_mode"] = pl.Buffered(1)
            return pl.BlockSpec(shape, lambda i: (0,) * len(shape), **kwargs)

        return pl.pallas_call(
            kernel,
            out_shape=out_shape,
            grid_spec=pltpu.PrefetchScalarGridSpec(
                num_scalar_prefetch=0,
                grid=grid,
                in_specs=[
                    pl.BlockSpec((tile_n, D), lambda i: (i, 0)),   # x rows
                    resident((D, d_ff)),                           # W1 (bf16, resident)
                    resident((1, d_ff)),                           # b1
                    resident((d_ff, D)),                           # W2 block-diag (bf16)
                    resident((1, D)),                              # b2 (group-tiled)
                    resident((1, D)),                              # LN gamma
                    resident((1, D)),                              # LN beta
                ],
                out_specs=pl.BlockSpec((tile_n, D), lambda i: (i, 0)),
            ),
            compiler_params=pltpu.CompilerParams(
                dimension_semantics=("parallel",),
                vmem_limit_bytes=vmem_limit,
            ),
            cost_estimate=cost,
        )

    args = (x2, w1_bf, b1_2, w2_bf, b2_2, gamma_2, beta_2)
    try:
        out2 = build_call(True)(*args)
    except Exception:
        # TODO(synk): pl.Buffered(1) single-buffering not supported on this jax
        # build; fall back to default double-buffered resident weights.
        out2 = build_call(False)(*args)

    if n_pad != N:
        out2 = out2[:N]
    return out2.reshape(B, L, D)


def _reference(x, w1, b1, w2, b2, gamma, beta, *, groups=2, eps=1e-5):
    """Pure-JAX port of the PyTorch module (eval mode) for verification."""
    B, L, D = x.shape
    h = jax.nn.relu(jnp.einsum("bld,df->blf", x, w1) + b1)
    d_ff = h.shape[-1]
    fg = d_ff // groups
    hg = h.reshape(B, L, groups, fg)
    yg = jnp.einsum("blgf,fe->blge", hg, w2) + b2
    y = yg.reshape(B, L, D)
    z = x + y
    mean = z.mean(-1, keepdims=True)
    var = ((z - mean) ** 2).mean(-1, keepdims=True)
    return (z - mean) / jnp.sqrt(var + eps) * gamma + beta


if __name__ == "__main__":
    key = jax.random.PRNGKey(0)
    B, L, d_model, d_ff, groups = 2, 8, 32, 64, 2
    fg, dg = d_ff // groups, d_model // groups

    k = jax.random.split(key, 7)
    x = jax.random.normal(k[0], (B, L, d_model), dtype=jnp.float32)
    w1 = jax.random.normal(k[1], (d_model, d_ff), dtype=jnp.float32) * 0.05
    b1 = jax.random.normal(k[2], (d_ff,), dtype=jnp.float32) * 0.05
    w2 = jax.random.normal(k[3], (fg, dg), dtype=jnp.float32) * 0.05
    b2 = jax.random.normal(k[4], (dg,), dtype=jnp.float32) * 0.05
    gamma = jnp.ones((d_model,), dtype=jnp.float32) + 0.1 * jax.random.normal(
        k[5], (d_model,), dtype=jnp.float32)
    beta = 0.1 * jax.random.normal(k[6], (d_model,), dtype=jnp.float32)

    out = lpwff_forward(x, w1, b1, w2, b2, gamma, beta, groups=groups)
    out = jax.block_until_ready(out)

    ref = _reference(x, w1, b1, w2, b2, gamma, beta, groups=groups)
    assert out.shape == (B, L, d_model)
    # bf16 MXU operands (f32 accumulation) -> bf16-appropriate tolerance.
    assert jnp.allclose(out, ref, atol=2e-2, rtol=2e-2), "mismatch vs reference"

    print("KERNEL_OK")
</pallas_src>

<mosaic_0001>
module attributes {stable_mosaic.version = 11 : i64} {
  func.func @_lpwff_kernel(%arg0: i32, %arg1: memref<128x32xf32, #tpu.memory_space<vmem>>, %arg2: memref<32x64xbf16, #tpu.memory_space<vmem>>, %arg3: memref<1x64xf32, #tpu.memory_space<vmem>>, %arg4: memref<64x32xbf16, #tpu.memory_space<vmem>>, %arg5: memref<1x32xf32, #tpu.memory_space<vmem>>, %arg6: memref<1x32xf32, #tpu.memory_space<vmem>>, %arg7: memref<1x32xf32, #tpu.memory_space<vmem>>, %arg8: memref<128x32xf32, #tpu.memory_space<vmem>>) attributes {dimension_semantics = [#tpu.dimension_semantics<parallel>], iteration_bounds = array<i64: 1>, scalar_prefetch = 0 : i64, scratch_operands = 0 : i64, tpu.core_type = #tpu.core_type<tc>, window_params = [{transform_indices = @transform_0, window_bounds = array<i64: 128, 32>}, {pipeline_mode = #tpu.pipeline_mode<synchronous>, transform_indices = @transform_1, window_bounds = array<i64: 32, 64>}, {pipeline_mode = #tpu.pipeline_mode<synchronous>, transform_indices = @transform_2, window_bounds = array<i64: 1, 64>}, {pipeline_mode = #tpu.pipeline_mode<synchronous>, transform_indices = @transform_3, window_bounds = array<i64: 64, 32>}, {pipeline_mode = #tpu.pipeline_mode<synchronous>, transform_indices = @transform_4, window_bounds = array<i64: 1, 32>}, {pipeline_mode = #tpu.pipeline_mode<synchronous>, transform_indices = @transform_5, window_bounds = array<i64: 1, 32>}, {pipeline_mode = #tpu.pipeline_mode<synchronous>, transform_indices = @transform_6, window_bounds = array<i64: 1, 32>}, {transform_indices = @transform_7, window_bounds = array<i64: 128, 32>}]} {
    %c0 = arith.constant 0 : index
    %c0_0 = arith.constant 0 : index
    %0 = vector.load %arg1[%c0, %c0_0] : memref<128x32xf32, #tpu.memory_space<vmem>>, vector<128x32xf32>
    %1 = arith.truncf %0 : vector<128x32xf32> to vector<128x32xbf16>
    %c0_1 = arith.constant 0 : index
    %c0_2 = arith.constant 0 : index
    %2 = vector.load %arg2[%c0_1, %c0_2] : memref<32x64xbf16, #tpu.memory_space<vmem>>, vector<32x64xbf16>
    %cst = arith.constant dense<0.000000e+00> : vector<128x64xf32>
    %3 = tpu.matmul %1, %2, %cst {dimension_numbers = #tpu.dot_dimension_numbers<[1], [0], [0], [1], [0, 0, 1, 1], [], []>} : vector<128x32xbf16>, vector<32x64xbf16>, vector<128x64xf32> -> vector<128x64xf32>
    %c0_3 = arith.constant 0 : index
    %c0_4 = arith.constant 0 : index
    %4 = vector.load %arg3[%c0_3, %c0_4] : memref<1x64xf32, #tpu.memory_space<vmem>>, vector<1x64xf32>
    %5 = vector.broadcast %4 : vector<1x64xf32> to vector<128x64xf32>
    %6 = arith.addf %3, %5 : vector<128x64xf32>
    %cst_5 = arith.constant 0.000000e+00 : f32
    %7 = vector.broadcast %cst_5 : f32 to vector<128x64xf32>
    %8 = arith.maximumf %6, %7 : vector<128x64xf32>
    %9 = arith.truncf %8 : vector<128x64xf32> to vector<128x64xbf16>
    %c0_6 = arith.constant 0 : index
    %c0_7 = arith.constant 0 : index
    %10 = vector.load %arg4[%c0_6, %c0_7] : memref<64x32xbf16, #tpu.memory_space<vmem>>, vector<64x32xbf16>
    %cst_8 = arith.constant dense<0.000000e+00> : vector<128x32xf32>
    %11 = tpu.matmul %9, %10, %cst_8 {dimension_numbers = #tpu.dot_dimension_numbers<[1], [0], [0], [1], [0, 0, 1, 1], [], []>} : vector<128x64xbf16>, vector<64x32xbf16>, vector<128x32xf32> -> vector<128x32xf32>
    %c0_9 = arith.constant 0 : index
    %c0_10 = arith.constant 0 : index
    %12 = vector.load %arg5[%c0_9, %c0_10] : memref<1x32xf32, #tpu.memory_space<vmem>>, vector<1x32xf32>
    %13 = vector.broadcast %12 : vector<1x32xf32> to vector<128x32xf32>
    %14 = arith.addf %11, %13 : vector<128x32xf32>
    %15 = arith.addf %0, %14 : vector<128x32xf32>
    %cst_11 = arith.constant dense<0.000000e+00> : vector<128xf32>
    %16 = vector.multi_reduction <add>, %15, %cst_11 [1] : vector<128x32xf32> to vector<128xf32>
    %17 = vector.shape_cast %16 : vector<128xf32> to vector<128x1xf32>
    %cst_12 = arith.constant 3.200000e+01 : f32
    %18 = vector.broadcast %cst_12 : f32 to vector<128x1xf32>
    %19 = arith.divf %17, %18 : vector<128x1xf32>
    %20 = vector.broadcast %19 : vector<128x1xf32> to vector<128x32xf32>
    %21 = arith.subf %15, %20 : vector<128x32xf32>
    %22 = arith.mulf %21, %21 : vector<128x32xf32>
    %cst_13 = arith.constant dense<0.000000e+00> : vector<128xf32>
    %23 = vector.multi_reduction <add>, %22, %cst_13 [1] : vector<128x32xf32> to vector<128xf32>
    %24 = vector.shape_cast %23 : vector<128xf32> to vector<128x1xf32>
    %cst_14 = arith.constant 3.200000e+01 : f32
    %25 = vector.broadcast %cst_14 : f32 to vector<128x1xf32>
    %26 = arith.divf %24, %25 : vector<128x1xf32>
    %cst_15 = arith.constant 9.99999974E-6 : f32
    %27 = vector.broadcast %cst_15 : f32 to vector<128x1xf32>
    %28 = arith.addf %26, %27 : vector<128x1xf32>
    %29 = math.rsqrt %28 : vector<128x1xf32>
    %30 = vector.broadcast %29 : vector<128x1xf32> to vector<128x32xf32>
    %31 = arith.mulf %21, %30 : vector<128x32xf32>
    %c0_16 = arith.constant 0 : index
    %c0_17 = arith.constant 0 : index
    %32 = vector.load %arg6[%c0_16, %c0_17] : memref<1x32xf32, #tpu.memory_space<vmem>>, vector<1x32xf32>
    %33 = vector.broadcast %32 : vector<1x32xf32> to vector<128x32xf32>
    %34 = arith.mulf %31, %33 : vector<128x32xf32>
    %c0_18 = arith.constant 0 : index
    %c0_19 = arith.constant 0 : index
    %35 = vector.load %arg7[%c0_18, %c0_19] : memref<1x32xf32, #tpu.memory_space<vmem>>, vector<1x32xf32>
    %36 = vector.broadcast %35 : vector<1x32xf32> to vector<128x32xf32>
    %37 = arith.addf %34, %36 : vector<128x32xf32>
    %c0_20 = arith.constant 0 : index
    %c0_21 = arith.constant 0 : index
    %38 = vector.load %arg8[%c0_20, %c0_21] : memref<128x32xf32, #tpu.memory_space<vmem>>, vector<128x32xf32>
    tpu.vector_store %arg8[%c0_20, %c0_21], %37 {strides = array<i32>} : memref<128x32xf32, #tpu.memory_space<vmem>>, vector<128x32xf32>,
    return
  }
  func.func @transform_0(%arg0: i32) -> (i32, i32) {
    %c0_i32 = arith.constant 0 : i32
    %c0_i32_0 = arith.constant 0 : i32
    return %arg0, %c0_i32 : i32, i32
  }
  func.func @transform_1(%arg0: i32) -> (i32, i32) {
    %c0_i32 = arith.constant 0 : i32
    %c0_i32_0 = arith.constant 0 : i32
    %c0_i32_1 = arith.constant 0 : i32
    return %c0_i32, %c0_i32_0 : i32, i32
  }
  func.func @transform_2(%arg0: i32) -> (i32, i32) {
    %c0_i32 = arith.constant 0 : i32
    %c0_i32_0 = arith.constant 0 : i32
    %c0_i32_1 = arith.constant 0 : i32
    return %c0_i32, %c0_i32_0 : i32, i32
  }
  func.func @transform_3(%arg0: i32) -> (i32, i32) {
    %c0_i32 = arith.constant 0 : i32
    %c0_i32_0 = arith.constant 0 : i32
    %c0_i32_1 = arith.constant 0 : i32
    return %c0_i32, %c0_i32_0 : i32, i32
  }
  func.func @transform_4(%arg0: i32) -> (i32, i32) {
    %c0_i32 = arith.constant 0 : i32
    %c0_i32_0 = arith.constant 0 : i32
    %c0_i32_1 = arith.constant 0 : i32
    return %c0_i32, %c0_i32_0 : i32, i32
  }
  func.func @transform_5(%arg0: i32) -> (i32, i32) {
    %c0_i32 = arith.constant 0 : i32
    %c0_i32_0 = arith.constant 0 : i32
    %c0_i32_1 = arith.constant 0 : i32
    return %c0_i32, %c0_i32_0 : i32, i32
  }
  func.func @transform_6(%arg0: i32) -> (i32, i32) {
    %c0_i32 = arith.constant 0 : i32
    %c0_i32_0 = arith.constant 0 : i32
    %c0_i32_1 = arith.constant 0 : i32
    return %c0_i32, %c0_i32_0 : i32, i32
  }
  func.func @transform_7(%arg0: i32) -> (i32, i32) {
    %c0_i32 = arith.constant 0 : i32
    %c0_i32_0 = arith.constant 0 : i32
    return %arg0, %c0_i32 : i32, i32
  }
}

module attributes {stable_mosaic.version = 11 : i64} {
  func.func @_lpwff_kernel(%arg0: i32, %arg1: memref<128x32xf32, #tpu.memory_space<vmem>>, %arg2: memref<32x64xbf16, #tpu.memory_space<vmem>>, %arg3: memref<1x64xf32, #tpu.memory_space<vmem>>, %arg4: memref<64x32xbf16, #tpu.memory_space<vmem>>, %arg5: memref<1x32xf32, #tpu.memory_space<vmem>>, %arg6: memref<1x32xf32, #tpu.memory_space<vmem>>, %arg7: memref<1x32xf32, #tpu.memory_space<vmem>>, %arg8: memref<128x32xf32, #tpu.memory_space<vmem>>) attributes {dimension_semantics = [#tpu.dimension_semantics<parallel>], iteration_bounds = array<i64: 1>, scalar_prefetch = 0 : i64, scratch_operands = 0 : i64, tpu.core_type = #tpu.core_type<tc>, window_params = [{transform_indices = @transform_0, window_bounds = array<i64: 128, 32>}, {pipeline_mode = #tpu.pipeline_mode<synchronous>, transform_indices = @transform_1, window_bounds = array<i64: 32, 64>}, {pipeline_mode = #tpu.pipeline_mode<synchronous>, transform_indices = @transform_2, window_bounds = array<i64: 1, 64>}, {pipeline_mode = #tpu.pipeline_mode<synchronous>, transform_indices = @transform_3, window_bounds = array<i64: 64, 32>}, {pipeline_mode = #tpu.pipeline_mode<synchronous>, transform_indices = @transform_4, window_bounds = array<i64: 1, 32>}, {pipeline_mode = #tpu.pipeline_mode<synchronous>, transform_indices = @transform_5, window_bounds = array<i64: 1, 32>}, {pipeline_mode = #tpu.pipeline_mode<synchronous>, transform_indices = @transform_6, window_bounds = array<i64: 1, 32>}, {transform_indices = @transform_7, window_bounds = array<i64: 128, 32>}]} {
    %c0 = arith.constant 0 : index
    %c0_0 = arith.constant 0 : index
    %0 = vector.load %arg1[%c0, %c0_0] : memref<128x32xf32, #tpu.memory_space<vmem>>, vector<128x32xf32>
    %1 = arith.truncf %0 : vector<128x32xf32> to vector<128x32xbf16>
    %c0_1 = arith.constant 0 : index
    %c0_2 = arith.constant 0 : index
    %2 = vector.load %arg2[%c0_1, %c0_2] : memref<32x64xbf16, #tpu.memory_space<vmem>>, vector<32x64xbf16>
    %cst = arith.constant dense<0.000000e+00> : vector<128x64xf32>
    %3 = tpu.matmul %1, %2, %cst {dimension_numbers = #tpu.dot_dimension_numbers<[1], [0], [0], [1], [0, 0, 1, 1], [], []>} : vector<128x32xbf16>, vector<32x64xbf16>, vector<128x64xf32> -> vector<128x64xf32>
    %c0_3 = arith.constant 0 : index
    %c0_4 = arith.constant 0 : index
    %4 = vector.load %arg3[%c0_3, %c0_4] : memref<1x64xf32, #tpu.memory_space<vmem>>, vector<1x64xf32>
    %5 = vector.broadcast %4 : vector<1x64xf32> to vector<128x64xf32>
    %6 = arith.addf %3, %5 : vector<128x64xf32>
    %cst_5 = arith.constant 0.000000e+00 : f32
    %7 = vector.broadcast %cst_5 : f32 to vector<128x64xf32>
    %8 = arith.maximumf %6, %7 : vector<128x64xf32>
    %9 = arith.truncf %8 : vector<128x64xf32> to vector<128x64xbf16>
    %c0_6 = arith.constant 0 : index
    %c0_7 = arith.constant 0 : index
    %10 = vector.load %arg4[%c0_6, %c0_7] : memref<64x32xbf16, #tpu.memory_space<vmem>>, vector<64x32xbf16>
    %cst_8 = arith.constant dense<0.000000e+00> : vector<128x32xf32>
    %11 = tpu.matmul %9, %10, %cst_8 {dimension_numbers = #tpu.dot_dimension_numbers<[1], [0], [0], [1], [0, 0, 1, 1], [], []>} : vector<128x64xbf16>, vector<64x32xbf16>, vector<128x32xf32> -> vector<128x32xf32>
    %c0_9 = arith.constant 0 : index
    %c0_10 = arith.constant 0 : index
    %12 = vector.load %arg5[%c0_9, %c0_10] : memref<1x32xf32, #tpu.memory_space<vmem>>, vector<1x32xf32>
    %13 = vector.broadcast %12 : vector<1x32xf32> to vector<128x32xf32>
    %14 = arith.addf %11, %13 : vector<128x32xf32>
    %15 = arith.addf %0, %14 : vector<128x32xf32>
    %cst_11 = arith.constant dense<0.000000e+00> : vector<128xf32>
    %16 = vector.multi_reduction <add>, %15, %cst_11 [1] : vector<128x32xf32> to vector<128xf32>
    %17 = vector.shape_cast %16 : vector<128xf32> to vector<128x1xf32>
    %cst_12 = arith.constant 3.200000e+01 : f32
    %18 = vector.broadcast %cst_12 : f32 to vector<128x1xf32>
    %19 = arith.divf %17, %18 : vector<128x1xf32>
    %20 = vector.broadcast %19 : vector<128x1xf32> to vector<128x32xf32>
    %21 = arith.subf %15, %20 : vector<128x32xf32>
    %22 = arith.mulf %21, %21 : vector<128x32xf32>
    %cst_13 = arith.constant dense<0.000000e+00> : vector<128xf32>
    %23 = vector.multi_reduction <add>, %22, %cst_13 [1] : vector<128x32xf32> to vector<128xf32>
    %24 = vector.shape_cast %23 : vector<128xf32> to vector<128x1xf32>
    %cst_14 = arith.constant 3.200000e+01 : f32
    %25 = vector.broadcast %cst_14 : f32 to vector<128x1xf32>
    %26 = arith.divf %24, %25 : vector<128x1xf32>
    %cst_15 = arith.constant 9.99999974E-6 : f32
    %27 = vector.broadcast %cst_15 : f32 to vector<128x1xf32>
    %28 = arith.addf %26, %27 : vector<128x1xf32>
    %29 = math.rsqrt %28 : vector<128x1xf32>
    %30 = vector.broadcast %29 : vector<128x1xf32> to vector<128x32xf32>
    %31 = arith.mulf %21, %30 : vector<128x32xf32>
    %c0_16 = arith.constant 0 : index
    %c0_17 = arith.constant 0 : index
    %32 = vector.load %arg6[%c0_16, %c0_17] : memref<1x32xf32, #tpu.memory_space<vmem>>, vector<1x32xf32>
    %33 = vector.broadcast %32 : vector<1x32xf32> to vector<128x32xf32>
    %34 = arith.mulf %31, %33 : vector<128x32xf32>
    %c0_18 = arith.constant 0 : index
    %c0_19 = arith.constant 0 : index
    %35 = vector.load %arg7[%c0_18, %c0_19] : memref<1x32xf32, #tpu.memory_space<vmem>>, vector<1x32xf32>
    %36 = vector.broadcast %35 : vector<1x32xf32> to vector<128x32xf32>
    %37 = arith.addf %34, %36 : vector<128x32xf32>
    %c0_20 = arith.constant 0 : index
    %c0_21 = arith.constant 0 : index
    %38 = vector.load %arg8[%c0_20, %c0_21] : memref<128x32xf32, #tpu.memory_space<vmem>>, vector<128x32xf32>
    tpu.vector_store %arg8[%c0_20, %c0_21], %37 {strides = array<i32>} : memref<128x32xf32, #tpu.memory_space<vmem>>, vector<128x32xf32>,
    return
  }
  func.func @transform_0(%arg0: i32) -> (i32, i32) {
    %c0_i32 = arith.constant 0 : i32
    %c0_i32_0 = arith.constant 0 : i32
    return %arg0, %c0_i32 : i32, i32
  }
  func.func @transform_1(%arg0: i32) -> (i32, i32) {
    %c0_i32 = arith.constant 0 : i32
    %c0_i32_0 = arith.constant 0 : i32
    %c0_i32_1 = arith.constant 0 : i32
    return %c0_i32, %c0_i32_0 : i32, i32
  }
  func.func @transform_2(%arg0: i32) -> (i32, i32) {
    %c0_i32 = arith.constant 0 : i32
    %c0_i32_0 = arith.constant 0 : i32
    %c0_i32_1 = arith.constant 0 : i32
    return %c0_i32, %c0_i32_0 : i32, i32
  }
  func.func @transform_3(%arg0: i32) -> (i32, i32) {
    %c0_i32 = arith.constant 0 : i32
    %c0_i32_0 = arith.constant 0 : i32
    %c0_i32_1 = arith.constant 0 : i32
    return %c0_i32, %c0_i32_0 : i32, i32
  }
  func.func @transform_4(%arg0: i32) -> (i32, i32) {
    %c0_i32 = arith.constant 0 : i32
    %c0_i32_0 = arith.constant 0 : i32
    %c0_i32_1 = arith.constant 0 : i32
    return %c0_i32, %c0_i32_0 : i32, i32
  }
  func.func @transform_5(%arg0: i32) -> (i32, i32) {
    %c0_i32 = arith.constant 0 : i32
    %c0_i32_0 = arith.constant 0 : i32
    %c0_i32_1 = arith.constant 0 : i32
    return %c0_i32, %c0_i32_0 : i32, i32
  }
  func.func @transform_6(%arg0: i32) -> (i32, i32) {
    %c0_i32 = arith.constant 0 : i32
    %c0_i32_0 = arith.constant 0 : i32
    %c0_i32_1 = arith.constant 0 : i32
    return %c0_i32, %c0_i32_0 : i32, i32
  }
  func.func @transform_7(%arg0: i32) -> (i32, i32) {
    %c0_i32 = arith.constant 0 : i32
    %c0_i32_0 = arith.constant 0 : i32
    return %arg0, %c0_i32 : i32, i32
  }
}

</mosaic_0001>

<bundles_post_ra>
// kernel: tpu_custom_call.1
= control target key start
LH: loop header
LB: loop body
LE: loop exit
PB: predicated region body
PF: predicated region fallthrough
CT: control target
= control target key end

     0   :  { %vm74_vm0 = vcmask 261120   ;;  %vm259_vm1 = vcmask 523264   ;;  %s1294_s1 = inlined_call_operand.vmem [shape: bf16[32,64], index: 1, kind: input, shape index: {}]   ;;  %s1295_s0 = inlined_call_operand.vmem [shape: f32[128,32], index: 0, kind: input, shape index: {}]   ;;  %s1296_s3 = inlined_call_operand.vmem [shape: bf16[64,32], index: 3, kind: input, shape index: {}]   ;;  %s1297_s2 = inlined_call_operand.vmem [shape: f32[1,64], index: 2, kind: input, shape index: {}]   ;;  %s1298_s4 = inlined_call_operand.vmem [shape: f32[1,32], index: 4, kind: input, shape index: {}]   ;;  %s1299_s5 = inlined_call_operand.vmem [shape: f32[1,32], index: 5, kind: input, shape index: {}]   ;;  %s1300_s6 = inlined_call_operand.vmem [shape: f32[1,32], index: 6, kind: input, shape index: {}]   ;;  %s1301_s7 = inlined_call_operand.vmem [shape: f32[128,32], index: 7, kind: output, shape index: {}]  }
   0x1   :  { %v764_v0 = vld [vmem:[%s1294_s1] sm:$0xff]   ;;  %v765_v1 = vld [vmem:[%s1294_s1 + $0x8] sm:$0xff]   ;;  %v863_v5 = vld [vmem:[%s1295_s0 + $0x10] sm:$0xff] }
   0x2   :  { %720 = vmatprep.subr.bf16.mxu0 %v764_v0  ;;  %v851_v2 = vld [vmem:[%s1295_s0] sm:$0xff]  ;;  %v856_v3 = vld [vmem:[%s1295_s0 + $0x8] sm:$0xff]  ;;  %v868_v6 = vld [vmem:[%s1295_s0 + $0x18] sm:$0xff] }
   0x3   :  { %721 = vmatpush3.bf16.msra.mxu0 %v764_v0  ;;  %v43_v4 = vpack.c.bf16 %v856_v3, %v851_v2  ;;  %v873_v7 = vld [vmem:[%s1295_s0 + $0x20] sm:$0xff]  ;;  %v878_v8 = vld [vmem:[%s1295_s0 + $0x28] sm:$0xff]  ;;  %v44_v9 = vpack.c.bf16 %v868_v6, %v863_v5  ;;  %v896_v13 = vld [vmem:[%s1295_s0 + $0x30] sm:$0xff] }
   0x4   :  { %722 = vmatprep.subr.bf16.mxu0 %v765_v1  ;;  %v45_v10 = vpack.c.bf16 %v878_v8, %v873_v7  ;;  %v766_v11 = vld [vmem:[%s1296_s3] sm:$0xff]   ;;  %v767_v12 = vld [vmem:[%s1296_s3 + $0x8] sm:$0xff]   ;;  %v901_v14 = vld [vmem:[%s1295_s0 + $0x38] sm:$0xff] }
   0x5   :  { %724 = vmatprep.mubr.msk.bf16.mxu0 %vm74_vm0, %v43_v4  ;;  %740 = vmatprep.subr.bf16.mxu1 %v766_v11  ;;  %v906_v15 = vld [vmem:[%s1295_s0 + $0x40] sm:$0xff]  ;;  %v911_v16 = vld [vmem:[%s1295_s0 + $0x48] sm:$0xff]  ;;  %v46_v17 = vpack.c.bf16 %v901_v14, %v896_v13  ;;  %v922_v19 = vld [vmem:[%s1295_s0 + $0x50] sm:$0xff] }
   0x6   :  { %741 = vmatpush3.bf16.msra.mxu1 %v766_v11  ;;  %v47_v18 = vpack.c.bf16 %v911_v16, %v906_v15  ;;  %v927_v20 = vld [vmem:[%s1295_s0 + $0x58] sm:$0xff]  ;;  %v932_v21 = vld [vmem:[%s1295_s0 + $0x60] sm:$0xff]  ;;  %v937_v22 = vld [vmem:[%s1295_s0 + $0x68] sm:$0xff] }
   0x7   :  { %723 = vmatpush3.bf16.msra.mxu0 %v765_v1  ;;  %742 = vmatprep.subr.bf16.mxu1 %v767_v12  ;;  %v48_v23 = vpack.c.bf16 %v927_v20, %v922_v19  ;;  %v49_v24 = vpack.c.bf16 %v937_v22, %v932_v21  ;;  %v948_v25 = vld [vmem:[%s1295_s0 + $0x70] sm:$0xff]  ;;  %v953_v26 = vld [vmem:[%s1295_s0 + $0x78] sm:$0xff]  ;;  %v672_v30 = vld [vmem:[%s1297_s2] ss:$0 sm:$0xff] }
   0x8   :  { %v50_v27 = vpack.c.bf16 %v953_v26, %v948_v25  ;;  %v768_v28 = vld [vmem:[%s1296_s3 + $0x10] sm:$0xff]   ;;  %v769_v29 = vld [vmem:[%s1296_s3 + $0x18] sm:$0xff]  }
   0xa   :  { %725 = vmatmul.mubr.msk.bf16.vlgmr.msra.gmra.mrb[0].mxu0 %vm74_vm0, %v44_v9  ;;  %743 = vmatpush3.bf16.msra.mxu1 %v767_v12 }
   0xb   :  { %728 = vmatprep.mubr.msk.bf16.mxu0 %vm74_vm0, %v45_v10  ;;  %744 = vmatprep.subr.bf16.mxu1 %v768_v28 }
   0xe   :  { %745 = vmatpush3.bf16.msra.mxu1 %v768_v28 }
   0xf   :  { %746 = vmatprep.subr.bf16.mxu1 %v769_v29 }
  0x12   :  { %729 = vmatmul.mubr.msk.bf16.gmra.mrb[4].mxu0 %vm74_vm0, %v46_v17  ;;  %747 = vmatpush3.bf16.msra.mxu1 %v769_v29 }
  0x13   :  { %732 = vmatprep.mubr.msk.bf16.mxu0 %vm74_vm0, %v47_v18 }
  0x1a   :  { %733 = vmatmul.mubr.msk.bf16.gmra.mrb[8].mxu0 %vm74_vm0, %v48_v23 }
  0x1b   :  { %736 = vmatprep.mubr.msk.bf16.mxu0 %vm74_vm0, %v49_v24 }
  0x22   :  { %737 = vmatmul.mubr.msk.bf16.gmra.mrb[12].mxu0 %vm74_vm0, %v50_v27 }
  0xdd   :  { %v726_v31 = vpop.f32.mrb[0].mxu0 }
  0xde   :  { %v142_v32 = vadd.f32 %v726_v31, %v672_v30  ;;  %v133_v33 = vpop.f32.mrb[1].mxu0 }
  0xdf   :  { %v134_v34 = vadd.f32 %v672_v30, %v133_v33  ;;  %v727_v35 = vpop.f32.mrb[2].mxu0 }
  0xe0   :  { %v145_v36 = vadd.f32 %v727_v35, %v672_v30  ;;  %v136_v37 = vpop.f32.mrb[3].mxu0  ;;  %v198_v39 = vmax.f32 %v142_v32, 0.0 }
  0xe1   :  { %v137_v38 = vadd.f32 %v672_v30, %v136_v37  ;;  %v196_v41 = vmax.f32 %v134_v34, 0.0 }
  0xe2   :  { %v199_v40 = vmax.f32 %v145_v36, 0.0 }
  0xe3   :  { %v197_v42 = vmax.f32 %v137_v38, 0.0 }
  0xe4   :  { %v213_v43 = vpack.c.bf16 %v199_v40, %v198_v39  ;;  %v978_v40 = vld [vmem:[%s1298_s4] ss:$0 sm:$0xff] }
  0xe5   :  { %v730_v44 = vpop.f32.mrb[4].mxu0  ;;  %v212_v45 = vpack.c.bf16 %v197_v42, %v196_v41 }
  0xe6   :  { %v158_v46 = vadd.f32 %v730_v44, %v672_v30  ;;  %v149_v47 = vpop.f32.mrb[5].mxu0 }
  0xe7   :  { %v150_v48 = vadd.f32 %v672_v30, %v149_v47  ;;  %v731_v49 = vpop.f32.mrb[6].mxu0  ;;  %748 = vmatprep.mubr.msk.bf16.mxu1 %vm259_vm1, %v212_v45 }
  0xe8   :  { %v202_v50 = vmax.f32 %v158_v46, 0.0  ;;  %v161_v51 = vadd.f32 %v731_v49, %v672_v30  ;;  %v152_v52 = vpop.f32.mrb[7].mxu0  ;;  %749 = vmatmul.mubr.msk.bf16.vlgmr.msra.gmra.mrb[0].mxu1 %vm259_vm1, %v213_v43 }
  0xe9   :  { %v153_v53 = vadd.f32 %v672_v30, %v152_v52  ;;  %v200_v55 = vmax.f32 %v150_v48, 0.0 }
  0xea   :  { %v203_v54 = vmax.f32 %v161_v51, 0.0 }
  0xeb   :  { %v201_v56 = vmax.f32 %v153_v53, 0.0 }
  0xec   :  { %v215_v57 = vpack.c.bf16 %v203_v54, %v202_v50 }
  0xed   :  { %v214_v58 = vpack.c.bf16 %v201_v56, %v200_v55  ;;  %v734_v59 = vpop.f32.mrb[8].mxu0 }
  0xee   :  { %v174_v60 = vadd.f32 %v734_v59, %v672_v30  ;;  %v165_v61 = vpop.f32.mrb[9].mxu0 }
  0xef   :  { %v166_v62 = vadd.f32 %v672_v30, %v165_v61  ;;  %v735_v63 = vpop.f32.mrb[10].mxu0  ;;  %752 = vmatprep.mubr.msk.bf16.mxu1 %vm259_vm1, %v214_v58 }
  0xf0   :  { %v206_v0 = vmax.f32 %v174_v60, 0.0  ;;  %v177_v1 = vadd.f32 %v735_v63, %v672_v30  ;;  %v168_v4 = vpop.f32.mrb[11].mxu0  ;;  %753 = vmatmul.mubr.msk.bf16.gmra.mrb[4].mxu1 %vm259_vm1, %v215_v57 }
  0xf1   :  { %v169_v9 = vadd.f32 %v672_v30, %v168_v4  ;;  %v204_v11 = vmax.f32 %v166_v62, 0.0 }
  0xf2   :  { %v207_v10 = vmax.f32 %v177_v1, 0.0 }
  0xf3   :  { %v205_v12 = vmax.f32 %v169_v9, 0.0 }
  0xf4   :  { %v217_v17 = vpack.c.bf16 %v207_v10, %v206_v0 }
  0xf5   :  { %v216_v18 = vpack.c.bf16 %v205_v12, %v204_v11  ;;  %v738_v23 = vpop.f32.mrb[12].mxu0 }
  0xf6   :  { %v190_v24 = vadd.f32 %v738_v23, %v672_v30  ;;  %v181_v27 = vpop.f32.mrb[13].mxu0 }
  0xf7   :  { %v182_v28 = vadd.f32 %v672_v30, %v181_v27  ;;  %v739_v29 = vpop.f32.mrb[14].mxu0  ;;  %756 = vmatprep.mubr.msk.bf16.mxu1 %vm259_vm1, %v216_v18 }
  0xf8   :  { %v210_v31 = vmax.f32 %v190_v24, 0.0  ;;  %v193_v32 = vadd.f32 %v739_v29, %v672_v30  ;;  %v184_v33 = vpop.f32.mrb[15].mxu0  ;;  %757 = vmatmul.mubr.msk.bf16.gmra.mrb[8].mxu1 %vm259_vm1, %v217_v17 }
  0xf9   :  { %v185_v34 = vadd.f32 %v672_v30, %v184_v33  ;;  %v208_v36 = vmax.f32 %v182_v28, 0.0 }
  0xfa   :  { %v211_v35 = vmax.f32 %v193_v32, 0.0 }
  0xfb   :  { %v209_v37 = vmax.f32 %v185_v34, 0.0 }
  0xfc   :  { %v219_v38 = vpack.c.bf16 %v211_v35, %v210_v31 }
  0xfd   :  { %v218_v39 = vpack.c.bf16 %v209_v37, %v208_v36 }
  0xff   :  { %760 = vmatprep.mubr.msk.bf16.mxu1 %vm259_vm1, %v218_v39 }
 0x100   :  { %761 = vmatmul.mubr.msk.bf16.gmra.mrb[12].mxu1 %vm259_vm1, %v219_v38 }
 0x1bb   :  { %v750_v41 = vpop.f32.mrb[0].mxu1 }
 0x1bc   :  { %v327_v42 = vadd.f32 %v750_v41, %v978_v40  ;;  %v318_v43 = vpop.f32.mrb[1].mxu1 }
 0x1bd   :  { %v319_v30 = vadd.f32 %v978_v40, %v318_v43  ;;  %v751_v44 = vpop.f32.mrb[2].mxu1 }
 0x1be   :  { %v330_v45 = vadd.f32 %v751_v44, %v978_v40  ;;  %v321_v46 = vpop.f32.mrb[3].mxu1  ;;  %v984_v47 = vadd.f32 %v327_v42, %v863_v5 }
 0x1bf   :  { %v322_v48 = vadd.f32 %v978_v40, %v321_v46  ;;  %v988_v49 = vadd.f32 %v319_v30, %v851_v2 }
 0x1c0   :  { %v403_v50 = vsel %vm74_vm0, %v984_v47, 0.0  ;;  %v993_v51 = vadd.f32 %v330_v45, %v868_v6 }
 0x1c1   :  { %404 = vadd.xlane.f32.xlu1 %v403_v50  ;;  %v397_v52 = vsel %vm74_vm0, %v988_v49, 0.0  ;;  %v998_v53 = vadd.f32 %v322_v48, %v856_v3 }
 0x1c2   :  { %398 = vadd.xlane.f32.xlu0 %v397_v52  ;;  %v406_v2 = vsel %vm74_vm0, %v993_v51, 0.0 }
 0x1c3   :  { %v754_v5 = vpop.f32.mrb[4].mxu1  ;;  %v400_v57 = vsel %vm74_vm0, %v998_v53, 0.0 }
 0x1c4   :  { %v343_v54 = vadd.f32 %v754_v5, %v978_v40  ;;  %v334_v55 = vpop.f32.mrb[5].mxu1 }
 0x1c5   :  { %v335_v56 = vadd.f32 %v978_v40, %v334_v55  ;;  %407 = vadd.xlane.f32.xlu1 %v406_v2  ;;  %v755_v6 = vpop.f32.mrb[6].mxu1 }
 0x1c6   :  { %v346_v58 = vadd.f32 %v755_v6, %v978_v40  ;;  %v337_v59 = vpop.f32.mrb[7].mxu1  ;;  %401 = vadd.xlane.f32.xlu0 %v400_v57  ;;  %v1008_v3 = vadd.f32 %v343_v54, %v896_v13 }
 0x1c7   :  { %v338_v60 = vadd.f32 %v978_v40, %v337_v59  ;;  %v1017_v63 = vadd.f32 %v335_v56, %v873_v7 }
 0x1c8   :  { %v415_v61 = vsel %vm74_vm0, %v1008_v3, 0.0  ;;  %v1014_v62 = vadd.f32 %v346_v58, %v901_v14 }
 0x1c9   :  { %v1022_v1 = vadd.f32 %v338_v60, %v878_v8  ;;  %v409_v14 = vsel %vm74_vm0, %v1017_v63, 0.0 }
 0x1ca   :  { %416 = vadd.xlane.f32.xlu0 %v415_v61  ;;  %v418_v0 = vsel %vm74_vm0, %v1014_v62, 0.0 }
 0x1cb   :  { %419 = vadd.xlane.f32.xlu1 %v418_v0  ;;  %v758_v13 = vpop.f32.mrb[8].mxu1  ;;  %v412_v17 = vsel %vm74_vm0, %v1022_v1, 0.0 }
 0x1cc   :  { %v359_v4 = vadd.f32 %v758_v13, %v978_v40  ;;  %v350_v9 = vpop.f32.mrb[9].mxu1 }
 0x1cd   :  { %v351_v10 = vadd.f32 %v978_v40, %v350_v9  ;;  %v759_v11 = vpop.f32.mrb[10].mxu1 }
 0x1ce   :  { %v362_v7 = vadd.f32 %v759_v11, %v978_v40  ;;  %v353_v12 = vpop.f32.mrb[11].mxu1  ;;  %410 = vadd.xlane.f32.xlu0 %v409_v14  ;;  %v1032_v8 = vadd.f32 %v359_v4, %v922_v19 }
 0x1cf   :  { %v354_v18 = vadd.f32 %v978_v40, %v353_v12  ;;  %413 = vadd.xlane.f32.xlu1 %v412_v17  ;;  %v1041_v27 = vadd.f32 %v351_v10, %v906_v15 }
 0x1d0   :  { %v427_v23 = vsel %vm74_vm0, %v1032_v8, 0.0  ;;  %v1038_v24 = vadd.f32 %v362_v7, %v927_v20 }
 0x1d1   :  { %v1046_v29 = vadd.f32 %v354_v18, %v911_v16  ;;  %v421_v20 = vsel %vm74_vm0, %v1041_v27, 0.0 }
 0x1d2   :  { %428 = vadd.xlane.f32.xlu0 %v427_v23  ;;  %v430_v28 = vsel %vm74_vm0, %v1038_v24, 0.0 }
 0x1d3   :  { %v762_v19 = vpop.f32.mrb[12].mxu1  ;;  %431 = vadd.xlane.f32.xlu1 %v430_v28  ;;  %v424_v35 = vsel %vm74_vm0, %v1046_v29, 0.0 }
 0x1d4   :  { %v366_v31 = vpop.f32.mrb[13].mxu1  ;;  %v375_v32 = vadd.f32 %v762_v19, %v978_v40 }
 0x1d5   :  { %v367_v33 = vadd.f32 %v978_v40, %v366_v31  ;;  %v763_v34 = vpop.f32.mrb[14].mxu1 }
 0x1d6   :  { %v369_v15 = vpop.f32.mrb[15].mxu1  ;;  %422 = vadd.xlane.f32.xlu0 %v421_v20  ;;  %v378_v36 = vadd.f32 %v763_v34, %v978_v40  ;;  %v1065_v41 = vadd.f32 %v375_v32, %v948_v25 }
 0x1d7   :  { %v370_v16 = vadd.f32 %v978_v40, %v369_v15  ;;  %425 = vadd.xlane.f32.xlu1 %v424_v35  ;;  %v1057_v37 = vadd.f32 %v367_v33, %v932_v21 }
 0x1d8   :  { %v1070_v43 = vadd.f32 %v378_v36, %v953_v26  ;;  %v439_v21 = vsel %vm74_vm0, %v1065_v41, 0.0 }
 0x1d9   :  { %v433_v38 = vsel %vm74_vm0, %v1057_v37, 0.0  ;;  %v1062_v39 = vadd.f32 %v370_v16, %v937_v22 }
 0x1da   :  { %434 = vadd.xlane.f32.xlu0 %v433_v38  ;;  %v442_v40 = vsel %vm74_vm0, %v1070_v43, 0.0 }
 0x1db   :  { %v436_v42 = vsel %vm74_vm0, %v1062_v39, 0.0 }
 0x1dc   :  { %437 = vadd.xlane.f32.xlu1 %v436_v42 }
 0x1de   :  { %440 = vadd.xlane.f32.xlu0 %v439_v21 }
 0x1e0   :  { %443 = vadd.xlane.f32.xlu1 %v442_v40 }
 0x24e   :  { %v405_v22 = vpop.xlane.xlu1 %404 }
 0x24f   :  { %v448_v30 = vmul.f32 0.03125, %v405_v22  ;;  %v399_v25 = vpop.xlane.xlu0 %398 }
 0x250   :  { %v446_v44 = vmul.f32 0.03125, %v399_v25 }
 0x251   :  { %v1077_v45 = vsub.f32 %v984_v47, %v448_v30 }
 0x252   :  { %v1080_v46 = vsub.f32 %v988_v49, %v446_v44  ;;  %v408_v26 = vpop.xlane.xlu1 %407 }
 0x253   :  { %v449_v48 = vmul.f32 0.03125, %v408_v26  ;;  %v402_v50 = vpop.xlane.xlu0 %401  ;;  %v480_v52 = vmul.f32 %v1077_v45, %v1077_v45 }
 0x254   :  { %v447_v5 = vmul.f32 0.03125, %v402_v50  ;;  %v478_v2 = vmul.f32 %v1080_v46, %v1080_v46 }
 0x255   :  { %v1085_v54 = vsub.f32 %v993_v51, %v449_v48  ;;  %v500_v55 = vsel %vm74_vm0, %v480_v52, 0.0 }
 0x256   :  { %v1091_v47 = vsub.f32 %v998_v53, %v447_v5  ;;  %501 = vadd.xlane.f32.xlu0 %v500_v55  ;;  %v494_v51 = vsel %vm74_vm0, %v478_v2, 0.0 }
 0x257   :  { %v417_v49 = vpop.xlane.xlu0 %416  ;;  %v481_v56 = vmul.f32 %v1085_v54, %v1085_v54 }
 0x258   :  { %v452_v6 = vmul.f32 0.03125, %v417_v49  ;;  %v420_v57 = vpop.xlane.xlu1 %419  ;;  %v479_v60 = vmul.f32 %v1091_v47, %v1091_v47 }
 0x259   :  { %v453_v58 = vmul.f32 0.03125, %v420_v57  ;;  %v503_v59 = vsel %vm74_vm0, %v481_v56, 0.0 }
 0x25a   :  { %v1100_v61 = vsub.f32 %v1008_v3, %v452_v6  ;;  %504 = vadd.xlane.f32.xlu1 %v503_v59  ;;  %495 = vadd.xlane.f32.xlu0 %v494_v51  ;;  %v497_v11 = vsel %vm74_vm0, %v479_v60, 0.0 }
 0x25b   :  { %v1103_v53 = vsub.f32 %v1014_v62, %v453_v58  ;;  %v411_v0 = vpop.xlane.xlu0 %410 }
 0x25c   :  { %v450_v13 = vmul.f32 0.03125, %v411_v0  ;;  %v414_v4 = vpop.xlane.xlu1 %413  ;;  %v484_v9 = vmul.f32 %v1100_v61, %v1100_v61 }
 0x25d   :  { %v451_v10 = vmul.f32 0.03125, %v414_v4  ;;  %v485_v14 = vmul.f32 %v1103_v53, %v1103_v53 }
 0x25e   :  { %v1111_v3 = vsub.f32 %v1017_v63, %v450_v13  ;;  %498 = vadd.xlane.f32.xlu1 %v497_v11  ;;  %v512_v7 = vsel %vm74_vm0, %v484_v9, 0.0 }
 0x25f   :  { %v1115_v62 = vsub.f32 %v1022_v1, %v451_v10  ;;  %513 = vadd.xlane.f32.xlu0 %v512_v7  ;;  %v429_v12 = vpop.xlane.xlu0 %428  ;;  %v515_v19 = vsel %vm74_vm0, %v485_v14, 0.0 }
 0x260   :  { %v456_v17 = vmul.f32 0.03125, %v429_v12  ;;  %v432_v18 = vpop.xlane.xlu1 %431  ;;  %v482_v23 = vmul.f32 %v1111_v3, %v1111_v3 }
 0x261   :  { %v457_v28 = vmul.f32 0.03125, %v432_v18  ;;  %v483_v63 = vmul.f32 %v1115_v62, %v1115_v62 }
 0x262   :  { %v1123_v31 = vsub.f32 %v1032_v8, %v456_v17  ;;  %516 = vadd.xlane.f32.xlu1 %v515_v19  ;;  %v506_v1 = vsel %vm74_vm0, %v482_v23, 0.0 }
 0x263   :  { %v1127_v32 = vsub.f32 %v1038_v24, %v457_v28  ;;  %507 = vadd.xlane.f32.xlu0 %v506_v1  ;;  %v423_v33 = vpop.xlane.xlu0 %422  ;;  %v509_v36 = vsel %vm74_vm0, %v483_v63, 0.0 }
 0x264   :  { %v454_v34 = vmul.f32 0.03125, %v423_v33  ;;  %v426_v20 = vpop.xlane.xlu1 %425  ;;  %v488_v15 = vmul.f32 %v1123_v31, %v1123_v31 }
 0x265   :  { %v455_v35 = vmul.f32 0.03125, %v426_v20  ;;  %v489_v8 = vmul.f32 %v1127_v32, %v1127_v32 }
 0x266   :  { %v1135_v16 = vsub.f32 %v1041_v27, %v454_v34  ;;  %510 = vadd.xlane.f32.xlu1 %v509_v36  ;;  %v524_v24 = vsel %vm74_vm0, %v488_v15, 0.0  ;;  %v1175_v34 = vld [vmem:[%s1299_s5] ss:$0 sm:$0xff] }
 0x267   :  { %v1139_v38 = vsub.f32 %v1046_v29, %v455_v35  ;;  %525 = vadd.xlane.f32.xlu0 %v524_v24  ;;  %v435_v42 = vpop.xlane.xlu0 %434  ;;  %v527_v30 = vsel %vm74_vm0, %v489_v8, 0.0  ;;  %v1181_v8 = vld [vmem:[%s1300_s6] ss:$0 sm:$0xff] }
 0x268   :  { %v458_v21 = vmul.f32 0.03125, %v435_v42  ;;  %v486_v40 = vmul.f32 %v1135_v16, %v1135_v16 }
 0x269   :  { %v438_v22 = vpop.xlane.xlu1 %437  ;;  %v487_v25 = vmul.f32 %v1139_v38, %v1139_v38 }
 0x26a   :  { %v1147_v27 = vsub.f32 %v1057_v37, %v458_v21  ;;  %v459_v44 = vmul.f32 0.03125, %v438_v22  ;;  %528 = vadd.xlane.f32.xlu1 %v527_v30  ;;  %v518_v29 = vsel %vm74_vm0, %v486_v40, 0.0 }
 0x26b   :  { %519 = vadd.xlane.f32.xlu0 %v518_v29  ;;  %v441_v26 = vpop.xlane.xlu0 %440  ;;  %v521_v55 = vsel %vm74_vm0, %v487_v25, 0.0 }
 0x26c   :  { %v1151_v48 = vsub.f32 %v1062_v39, %v459_v44  ;;  %v460_v50 = vmul.f32 0.03125, %v441_v26  ;;  %v490_v52 = vmul.f32 %v1147_v27, %v1147_v27 }
 0x26d   :  { %v444_v5 = vpop.xlane.xlu1 %443 }
 0x26e   :  { %v1157_v2 = vsub.f32 %v1065_v41, %v460_v50  ;;  %v461_v37 = vmul.f32 0.03125, %v444_v5  ;;  %522 = vadd.xlane.f32.xlu1 %v521_v55  ;;  %v530_v49 = vsel %vm74_vm0, %v490_v52, 0.0  ;;  %v491_v56 = vmul.f32 %v1151_v48, %v1151_v48 }
 0x26f   :  { %531 = vadd.xlane.f32.xlu0 %v530_v49 }
 0x270   :  { %v1163_v39 = vsub.f32 %v1070_v43, %v461_v37  ;;  %v533_v6 = vsel %vm74_vm0, %v491_v56, 0.0  ;;  %v492_v57 = vmul.f32 %v1157_v2, %v1157_v2 }
 0x272   :  { %534 = vadd.xlane.f32.xlu1 %v533_v6  ;;  %v536_v41 = vsel %vm74_vm0, %v492_v57, 0.0  ;;  %v493_v58 = vmul.f32 %v1163_v39, %v1163_v39 }
 0x273   :  { %537 = vadd.xlane.f32.xlu0 %v536_v41 }
 0x274   :  { %v539_v59 = vsel %vm74_vm0, %v493_v58, 0.0 }
 0x276   :  { %540 = vadd.xlane.f32.xlu1 %v539_v59 }
 0x2e3   :  { %v502_v51 = vpop.xlane.xlu0 %501 }
 0x2e4   :  { %v544_v60 = vmul.f32 0.03125, %v502_v51 }
 0x2e6   :  { %v560_v0 = vadd.f32 1e-05, %v544_v60 }
 0x2e7   :  { %v505_v43 = vpop.xlane.xlu1 %504  ;;  %v496_v13 = vpop.xlane.xlu0 %495 }
 0x2e8   :  { %770 = vrsqrt.f32 %v560_v0  ;;  %v545_v4 = vmul.f32 0.03125, %v505_v43  ;;  %v542_v9 = vmul.f32 0.03125, %v496_v13 }
 0x2ea   :  { %v561_v10 = vadd.f32 1e-05, %v545_v4  ;;  %v558_v11 = vadd.f32 1e-05, %v542_v9 }
 0x2eb   :  { %v499_v14 = vpop.xlane.xlu1 %498 }
 0x2ec   :  { %772 = vrsqrt.f32 %v561_v10  ;;  %v543_v7 = vmul.f32 0.03125, %v499_v14  ;;  %v514_v12 = vpop.xlane.xlu0 %513 }
 0x2ed   :  { %774 = vrsqrt.f32 %v558_v11  ;;  %v548_v17 = vmul.f32 0.03125, %v514_v12 }
 0x2ee   :  { %v559_v18 = vadd.f32 1e-05, %v543_v7 }
 0x2ef   :  { %v564_v23 = vadd.f32 1e-05, %v548_v17  ;;  %v517_v28 = vpop.xlane.xlu1 %516 }
 0x2f0   :  { %776 = vrsqrt.f32 %v559_v18  ;;  %v549_v19 = vmul.f32 0.03125, %v517_v28  ;;  %v508_v63 = vpop.xlane.xlu0 %507 }
 0x2f1   :  { %778 = vrsqrt.f32 %v564_v23  ;;  %v546_v1 = vmul.f32 0.03125, %v508_v63 }
 0x2f2   :  { %v771_v33 = vpop.eup %770  ;;  %v565_v20 = vadd.f32 1e-05, %v549_v19 }
 0x2f3   :  { %v592_v15 = vmul.f32 %v771_v33, %v1077_v45  ;;  %v562_v35 = vadd.f32 1e-05, %v546_v1  ;;  %v511_v36 = vpop.xlane.xlu1 %510 }
 0x2f4   :  { %780 = vrsqrt.f32 %v565_v20  ;;  %v547_v24 = vmul.f32 0.03125, %v511_v36  ;;  %v526_v42 = vpop.xlane.xlu0 %525 }
 0x2f5   :  { %v615_v21 = vmul.f32 %v1175_v34, %v592_v15  ;;  %782 = vrsqrt.f32 %v562_v35  ;;  %v552_v40 = vmul.f32 0.03125, %v526_v42 }
 0x2f6   :  { %v773_v22 = vpop.eup %772  ;;  %v563_v30 = vadd.f32 1e-05, %v547_v24 }
 0x2f7   :  { %v775_v25 = vpop.eup %774  ;;  %v638_v44 = vadd.f32 %v1181_v8, %v615_v21  ;;  %v593_v45 = vmul.f32 %v773_v22, %v1085_v54  ;;  %v568_v29 = vadd.f32 1e-05, %v552_v40  ;;  %v529_v26 = vpop.xlane.xlu1 %528 }
 0x2f8   :  { %v590_v50 = vmul.f32 %v775_v25, %v1080_v46  ;;  %784 = vrsqrt.f32 %v563_v30  ;;  %v553_v52 = vmul.f32 0.03125, %v529_v26  ;;  %v520_v5 = vpop.xlane.xlu0 %519 }
 0x2f9   :  { %654 = vst.msk [vmem:[%s1301_s7 + $0x10] sm:$0xff] %vm74_vm0, %v638_v44  ;;  %v616_v55 = vmul.f32 %v1175_v34, %v593_v45  ;;  %786 = vrsqrt.f32 %v568_v29  ;;  %v550_v37 = vmul.f32 0.03125, %v520_v5 }
 0x2fa   :  { %v777_v49 = vpop.eup %776  ;;  %v613_v56 = vmul.f32 %v1175_v34, %v590_v50  ;;  %v569_v54 = vadd.f32 1e-05, %v553_v52 }
 0x2fb   :  { %v779_v6 = vpop.eup %778  ;;  %v639_v57 = vadd.f32 %v1181_v8, %v616_v55  ;;  %v591_v46 = vmul.f32 %v777_v49, %v1091_v47  ;;  %v566_v41 = vadd.f32 1e-05, %v550_v37  ;;  %v523_v58 = vpop.xlane.xlu1 %522 }
 0x2fc   :  { %v636_v59 = vadd.f32 %v1181_v8, %v613_v56  ;;  %v596_v51 = vmul.f32 %v779_v6, %v1100_v61  ;;  %788 = vrsqrt.f32 %v569_v54  ;;  %v551_v60 = vmul.f32 0.03125, %v523_v58  ;;  %v532_v0 = vpop.xlane.xlu0 %531 }
 0x2fd   :  { %655 = vst.msk [vmem:[%s1301_s7 + $0x18] sm:$0xff] %vm74_vm0, %v639_v57  ;;  %v614_v43 = vmul.f32 %v1175_v34, %v591_v46  ;;  %790 = vrsqrt.f32 %v566_v41  ;;  %v554_v13 = vmul.f32 0.03125, %v532_v0 }
 0x2fe   :  { %v781_v4 = vpop.eup %780  ;;  %652 = vst.msk [vmem:[%s1301_s7] sm:$0xff] %vm74_vm0, %v636_v59  ;;  %v619_v47 = vmul.f32 %v1175_v34, %v596_v51  ;;  %v567_v61 = vadd.f32 1e-05, %v551_v60 }
 0x2ff   :  { %v783_v9 = vpop.eup %782  ;;  %v637_v10 = vadd.f32 %v1181_v8, %v614_v43  ;;  %v597_v11 = vmul.f32 %v781_v4, %v1103_v53  ;;  %v570_v14 = vadd.f32 1e-05, %v554_v13  ;;  %v535_v7 = vpop.xlane.xlu1 %534 }
 0x300   :  { %v642_v12 = vadd.f32 %v1181_v8, %v619_v47  ;;  %v594_v17 = vmul.f32 %v783_v9, %v1111_v3  ;;  %792 = vrsqrt.f32 %v567_v61  ;;  %v555_v18 = vmul.f32 0.03125, %v535_v7  ;;  %v538_v23 = vpop.xlane.xlu0 %537 }
 0x301   :  { %653 = vst.msk [vmem:[%s1301_s7 + $0x8] sm:$0xff] %vm74_vm0, %v637_v10  ;;  %v620_v28 = vmul.f32 %v1175_v34, %v597_v11  ;;  %794 = vrsqrt.f32 %v570_v14  ;;  %v556_v19 = vmul.f32 0.03125, %v538_v23 }
 0x302   :  { %v785_v63 = vpop.eup %784  ;;  %658 = vst.msk [vmem:[%s1301_s7 + $0x30] sm:$0xff] %vm74_vm0, %v642_v12  ;;  %v617_v53 = vmul.f32 %v1175_v34, %v594_v17  ;;  %v571_v3 = vadd.f32 1e-05, %v555_v18 }
 0x303   :  { %v787_v1 = vpop.eup %786  ;;  %v643_v33 = vadd.f32 %v1181_v8, %v620_v28  ;;  %v595_v20 = vmul.f32 %v785_v63, %v1115_v62  ;;  %v572_v15 = vadd.f32 1e-05, %v556_v19  ;;  %v541_v35 = vpop.xlane.xlu1 %540 }
 0x304   :  { %v640_v36 = vadd.f32 %v1181_v8, %v617_v53  ;;  %v600_v24 = vmul.f32 %v787_v1, %v1123_v31  ;;  %796 = vrsqrt.f32 %v571_v3  ;;  %v557_v42 = vmul.f32 0.03125, %v541_v35 }
 0x305   :  { %659 = vst.msk [vmem:[%s1301_s7 + $0x38] sm:$0xff] %vm74_vm0, %v643_v33  ;;  %v618_v21 = vmul.f32 %v1175_v34, %v595_v20  ;;  %798 = vrsqrt.f32 %v572_v15 }
 0x306   :  { %v789_v40 = vpop.eup %788  ;;  %656 = vst.msk [vmem:[%s1301_s7 + $0x20] sm:$0xff] %vm74_vm0, %v640_v36  ;;  %v623_v62 = vmul.f32 %v1175_v34, %v600_v24  ;;  %v573_v22 = vadd.f32 1e-05, %v557_v42 }
 0x307   :  { %v791_v31 = vpop.eup %790  ;;  %v641_v30 = vadd.f32 %v1181_v8, %v618_v21  ;;  %v601_v25 = vmul.f32 %v789_v40, %v1127_v32 }
 0x308   :  { %v646_v44 = vadd.f32 %v1181_v8, %v623_v62  ;;  %v598_v45 = vmul.f32 %v791_v31, %v1135_v16  ;;  %800 = vrsqrt.f32 %v573_v22 }
 0x309   :  { %657 = vst.msk [vmem:[%s1301_s7 + $0x28] sm:$0xff] %vm74_vm0, %v641_v30  ;;  %v624_v29 = vmul.f32 %v1175_v34, %v601_v25 }
 0x30a   :  { %v793_v26 = vpop.eup %792  ;;  %662 = vst.msk [vmem:[%s1301_s7 + $0x50] sm:$0xff] %vm74_vm0, %v646_v44  ;;  %v621_v32 = vmul.f32 %v1175_v34, %v598_v45 }
 0x30b   :  { %v795_v50 = vpop.eup %794  ;;  %v647_v52 = vadd.f32 %v1181_v8, %v624_v29  ;;  %v599_v16 = vmul.f32 %v793_v26, %v1139_v38 }
 0x30c   :  { %v644_v5 = vadd.f32 %v1181_v8, %v621_v32  ;;  %v602_v55 = vmul.f32 %v795_v50, %v1147_v27 }
 0x30d   :  { %663 = vst.msk [vmem:[%s1301_s7 + $0x58] sm:$0xff] %vm74_vm0, %v647_v52  ;;  %v622_v37 = vmul.f32 %v1175_v34, %v599_v16 }
 0x30e   :  { %v797_v49 = vpop.eup %796  ;;  %660 = vst.msk [vmem:[%s1301_s7 + $0x40] sm:$0xff] %vm74_vm0, %v644_v5  ;;  %v625_v56 = vmul.f32 %v1175_v34, %v602_v55 }
 0x30f   :  { %v799_v38 = vpop.eup %798  ;;  %v645_v54 = vadd.f32 %v1181_v8, %v622_v37  ;;  %v603_v27 = vmul.f32 %v797_v49, %v1151_v48 }
 0x310   :  { %v648_v6 = vadd.f32 %v1181_v8, %v625_v56  ;;  %v604_v57 = vmul.f32 %v799_v38, %v1157_v2 }
 0x311   :  { %661 = vst.msk [vmem:[%s1301_s7 + $0x48] sm:$0xff] %vm74_vm0, %v645_v54  ;;  %v626_v46 = vmul.f32 %v1175_v34, %v603_v27 }
 0x312   :  { %v801_v41 = vpop.eup %800  ;;  %664 = vst.msk [vmem:[%s1301_s7 + $0x60] sm:$0xff] %vm74_vm0, %v648_v6  ;;  %v627_v58 = vmul.f32 %v1175_v34, %v604_v57 }
 0x313   :  { %v649_v48 = vadd.f32 %v1181_v8, %v626_v46  ;;  %v605_v59 = vmul.f32 %v801_v41, %v1163_v39 }
 0x314   :  { %v650_v2 = vadd.f32 %v1181_v8, %v627_v58 }
 0x315   :  { %665 = vst.msk [vmem:[%s1301_s7 + $0x68] sm:$0xff] %vm74_vm0, %v649_v48  ;;  %v628_v51 = vmul.f32 %v1175_v34, %v605_v59 }
 0x316   :  { %666 = vst.msk [vmem:[%s1301_s7 + $0x70] sm:$0xff] %vm74_vm0, %v650_v2 }
 0x317   :  { %v651_v60 = vadd.f32 %v1181_v8, %v628_v51 }
 0x319   :  { %667 = vst.msk [vmem:[%s1301_s7 + $0x78] sm:$0xff] %vm74_vm0, %v651_v60 }

// kernel: tpu_custom_call.1
= control target key start
LH: loop header
LB: loop body
LE: loop exit
PB: predicated region body
PF: predicated region fallthrough
CT: control target
= control target key end

     0   :  { %vm74_vm0 = vcmask 261120   ;;  %vm259_vm1 = vcmask 523264   ;;  %s1294_s1 = inlined_call_operand.vmem [shape: bf16[32,64], index: 1, kind: input, shape index: {}]   ;;  %s1295_s0 = inlined_call_operand.vmem [shape: f32[128,32], index: 0, kind: input, shape index: {}]   ;;  %s1296_s3 = inlined_call_operand.vmem [shape: bf16[64,32], index: 3, kind: input, shape index: {}]   ;;  %s1297_s2 = inlined_call_operand.vmem [shape: f32[1,64], index: 2, kind: input, shape index: {}]   ;;  %s1298_s4 = inlined_call_operand.vmem [shape: f32[1,32], index: 4, kind: input, shape index: {}]   ;;  %s1299_s5 = inlined_call_operand.vmem [shape: f32[1,32], index: 5, kind: input, shape index: {}]   ;;  %s1300_s6 = inlined_call_operand.vmem [shape: f32[1,32], index: 6, kind: input, shape index: {}]   ;;  %s1301_s7 = inlined_call_operand.vmem [shape: f32[128,32], index: 7, kind: output, shape index: {}]  }
   0x1   :  { %v764_v0 = vld [vmem:[%s1294_s1] sm:$0xff]   ;;  %v765_v1 = vld [vmem:[%s1294_s1 + $0x8] sm:$0xff]   ;;  %v863_v5 = vld [vmem:[%s1295_s0 + $0x10] sm:$0xff] }
   0x2   :  { %720 = vmatprep.subr.bf16.mxu0 %v764_v0  ;;  %v851_v2 = vld [vmem:[%s1295_s0] sm:$0xff]  ;;  %v856_v3 = vld [vmem:[%s1295_s0 + $0x8] sm:$0xff]  ;;  %v868_v6 = vld [vmem:[%s1295_s0 + $0x18] sm:$0xff] }
   0x3   :  { %721 = vmatpush3.bf16.msra.mxu0 %v764_v0  ;;  %v43_v4 = vpack.c.bf16 %v856_v3, %v851_v2  ;;  %v873_v7 = vld [vmem:[%s1295_s0 + $0x20] sm:$0xff]  ;;  %v878_v8 = vld [vmem:[%s1295_s0 + $0x28] sm:$0xff]  ;;  %v44_v9 = vpack.c.bf16 %v868_v6, %v863_v5  ;;  %v896_v13 = vld [vmem:[%s1295_s0 + $0x30] sm:$0xff] }
   0x4   :  { %722 = vmatprep.subr.bf16.mxu0 %v765_v1  ;;  %v45_v10 = vpack.c.bf16 %v878_v8, %v873_v7  ;;  %v766_v11 = vld [vmem:[%s1296_s3] sm:$0xff]   ;;  %v767_v12 = vld [vmem:[%s1296_s3 + $0x8] sm:$0xff]   ;;  %v901_v14 = vld [vmem:[%s1295_s0 + $0x38] sm:$0xff] }
   0x5   :  { %724 = vmatprep.mubr.msk.bf16.mxu0 %vm74_vm0, %v43_v4  ;;  %740 = vmatprep.subr.bf16.mxu1 %v766_v11  ;;  %v906_v15 = vld [vmem:[%s1295_s0 + $0x40] sm:$0xff]  ;;  %v911_v16 = vld [vmem:[%s1295_s0 + $0x48] sm:$0xff]  ;;  %v46_v17 = vpack.c.bf16 %v901_v14, %v896_v13  ;;  %v922_v19 = vld [vmem:[%s1295_s0 + $0x50] sm:$0xff] }
   0x6   :  { %741 = vmatpush3.bf16.msra.mxu1 %v766_v11  ;;  %v47_v18 = vpack.c.bf16 %v911_v16, %v906_v15  ;;  %v927_v20 = vld [vmem:[%s1295_s0 + $0x58] sm:$0xff]  ;;  %v932_v21 = vld [vmem:[%s1295_s0 + $0x60] sm:$0xff]  ;;  %v937_v22 = vld [vmem:[%s1295_s0 + $0x68] sm:$0xff] }
   0x7   :  { %723 = vmatpush3.bf16.msra.mxu0 %v765_v1  ;;  %742 = vmatprep.subr.bf16.mxu1 %v767_v12  ;;  %v48_v23 = vpack.c.bf16 %v927_v20, %v922_v19  ;;  %v49_v24 = vpack.c.bf16 %v937_v22, %v932_v21  ;;  %v948_v25 = vld [vmem:[%s1295_s0 + $0x70] sm:$0xff]  ;;  %v953_v26 = vld [vmem:[%s1295_s0 + $0x78] sm:$0xff]  ;;  %v672_v30 = vld [vmem:[%s1297_s2] ss:$0 sm:$0xff] }
   0x8   :  { %v50_v27 = vpack.c.bf16 %v953_v26, %v948_v25  ;;  %v768_v28 = vld [vmem:[%s1296_s3 + $0x10] sm:$0xff]   ;;  %v769_v29 = vld [vmem:[%s1296_s3 + $0x18] sm:$0xff]  }
   0xa   :  { %725 = vmatmul.mubr.msk.bf16.vlgmr.msra.gmra.mrb[0].mxu0 %vm74_vm0, %v44_v9  ;;  %743 = vmatpush3.bf16.msra.mxu1 %v767_v12 }
   0xb   :  { %728 = vmatprep.mubr.msk.bf16.mxu0 %vm74_vm0, %v45_v10  ;;  %744 = vmatprep.subr.bf16.mxu1 %v768_v28 }
   0xe   :  { %745 = vmatpush3.bf16.msra.mxu1 %v768_v28 }
   0xf   :  { %746 = vmatprep.subr.bf16.mxu1 %v769_v29 }
  0x12   :  { %729 = vmatmul.mubr.msk.bf16.gmra.mrb[4].mxu0 %vm74_vm0, %v46_v17  ;;  %747 = vmatpush3.bf16.msra.mxu1 %v769_v29 }
  0x13   :  { %732 = vmatprep.mubr.msk.bf16.mxu0 %vm74_vm0, %v47_v18 }
  0x1a   :  { %733 = vmatmul.mubr.msk.bf16.gmra.mrb[8].mxu0 %vm74_vm0, %v48_v23 }
  0x1b   :  { %736 = vmatprep.mubr.msk.bf16.mxu0 %vm74_vm0, %v49_v24 }
  0x22   :  { %737 = vmatmul.mubr.msk.bf16.gmra.mrb[12].mxu0 %vm74_vm0, %v50_v27 }
  0xdd   :  { %v726_v31 = vpop.f32.mrb[0].mxu0 }
  0xde   :  { %v142_v32 = vadd.f32 %v726_v31, %v672_v30  ;;  %v133_v33 = vpop.f32.mrb[1].mxu0 }
  0xdf   :  { %v134_v34 = vadd.f32 %v672_v30, %v133_v33  ;;  %v727_v35 = vpop.f32.mrb[2].mxu0 }
  0xe0   :  { %v145_v36 = vadd.f32 %v727_v35, %v672_v30  ;;  %v136_v37 = vpop.f32.mrb[3].mxu0  ;;  %v198_v39 = vmax.f32 %v142_v32, 0.0 }
  0xe1   :  { %v137_v38 = vadd.f32 %v672_v30, %v136_v37  ;;  %v196_v41 = vmax.f32 %v134_v34, 0.0 }
  0xe2   :  { %v199_v40 = vmax.f32 %v145_v36, 0.0 }
  0xe3   :  { %v197_v42 = vmax.f32 %v137_v38, 0.0 }
  0xe4   :  { %v213_v43 = vpack.c.bf16 %v199_v40, %v198_v39  ;;  %v978_v40 = vld [vmem:[%s1298_s4] ss:$0 sm:$0xff] }
  0xe5   :  { %v730_v44 = vpop.f32.mrb[4].mxu0  ;;  %v212_v45 = vpack.c.bf16 %v197_v42, %v196_v41 }
  0xe6   :  { %v158_v46 = vadd.f32 %v730_v44, %v672_v30  ;;  %v149_v47 = vpop.f32.mrb[5].mxu0 }
  0xe7   :  { %v150_v48 = vadd.f32 %v672_v30, %v149_v47  ;;  %v731_v49 = vpop.f32.mrb[6].mxu0  ;;  %748 = vmatprep.mubr.msk.bf16.mxu1 %vm259_vm1, %v212_v45 }
  0xe8   :  { %v202_v50 = vmax.f32 %v158_v46, 0.0  ;;  %v161_v51 = vadd.f32 %v731_v49, %v672_v30  ;;  %v152_v52 = vpop.f32.mrb[7].mxu0  ;;  %749 = vmatmul.mubr.msk.bf16.vlgmr.msra.gmra.mrb[0].mxu1 %vm259_vm1, %v213_v43 }
  0xe9   :  { %v153_v53 = vadd.f32 %v672_v30, %v152_v52  ;;  %v200_v55 = vmax.f32 %v150_v48, 0.0 }
  0xea   :  { %v203_v54 = vmax.f32 %v161_v51, 0.0 }
  0xeb   :  { %v201_v56 = vmax.f32 %v153_v53, 0.0 }
  0xec   :  { %v215_v57 = vpack.c.bf16 %v203_v54, %v202_v50 }
  0xed   :  { %v214_v58 = vpack.c.bf16 %v201_v56, %v200_v55  ;;  %v734_v59 = vpop.f32.mrb[8].mxu0 }
  0xee   :  { %v174_v60 = vadd.f32 %v734_v59, %v672_v30  ;;  %v165_v61 = vpop.f32.mrb[9].mxu0 }
  0xef   :  { %v166_v62 = vadd.f32 %v672_v30, %v165_v61  ;;  %v735_v63 = vpop.f32.mrb[10].mxu0  ;;  %752 = vmatprep.mubr.msk.bf16.mxu1 %vm259_vm1, %v214_v58 }
  0xf0   :  { %v206_v0 = vmax.f32 %v174_v60, 0.0  ;;  %v177_v1 = vadd.f32 %v735_v63, %v672_v30  ;;  %v168_v4 = vpop.f32.mrb[11].mxu0  ;;  %753 = vmatmul.mubr.msk.bf16.gmra.mrb[4].mxu1 %vm259_vm1, %v215_v57 }
  0xf1   :  { %v169_v9 = vadd.f32 %v672_v30, %v168_v4  ;;  %v204_v11 = vmax.f32 %v166_v62, 0.0 }
  0xf2   :  { %v207_v10 = vmax.f32 %v177_v1, 0.0 }
  0xf3   :  { %v205_v12 = vmax.f32 %v169_v9, 0.0 }
  0xf4   :  { %v217_v17 = vpack.c.bf16 %v207_v10, %v206_v0 }
  0xf5   :  { %v216_v18 = vpack.c.bf16 %v205_v12, %v204_v11  ;;  %v738_v23 = vpop.f32.mrb[12].mxu0 }
  0xf6   :  { %v190_v24 = vadd.f32 %v738_v23, %v672_v30  ;;  %v181_v27 = vpop.f32.mrb[13].mxu0 }
  0xf7   :  { %v182_v28 = vadd.f32 %v672_v30, %v181_v27  ;;  %v739_v29 = vpop.f32.mrb[14].mxu0  ;;  %756 = vmatprep.mubr.msk.bf16.mxu1 %vm259_vm1, %v216_v18 }
  0xf8   :  { %v210_v31 = vmax.f32 %v190_v24, 0.0  ;;  %v193_v32 = vadd.f32 %v739_v29, %v672_v30  ;;  %v184_v33 = vpop.f32.mrb[15].mxu0  ;;  %757 = vmatmul.mubr.msk.bf16.gmra.mrb[8].mxu1 %vm259_vm1, %v217_v17 }
  0xf9   :  { %v185_v34 = vadd.f32 %v672_v30, %v184_v33  ;;  %v208_v36 = vmax.f32 %v182_v28, 0.0 }
  0xfa   :  { %v211_v35 = vmax.f32 %v193_v32, 0.0 }
  0xfb   :  { %v209_v37 = vmax.f32 %v185_v34, 0.0 }
  0xfc   :  { %v219_v38 = vpack.c.bf16 %v211_v35, %v210_v31 }
  0xfd   :  { %v218_v39 = vpack.c.bf16 %v209_v37, %v208_v36 }
  0xff   :  { %760 = vmatprep.mubr.msk.bf16.mxu1 %vm259_vm1, %v218_v39 }
 0x100   :  { %761 = vmatmul.mubr.msk.bf16.gmra.mrb[12].mxu1 %vm259_vm1, %v219_v38 }
 0x1bb   :  { %v750_v41 = vpop.f32.mrb[0].mxu1 }
 0x1bc   :  { %v327_v42 = vadd.f32 %v750_v41, %v978_v40  ;;  %v318_v43 = vpop.f32.mrb[1].mxu1 }
 0x1bd   :  { %v319_v30 = vadd.f32 %v978_v40, %v318_v43  ;;  %v751_v44 = vpop.f32.mrb[2].mxu1 }
 0x1be   :  { %v330_v45 = vadd.f32 %v751_v44, %v978_v40  ;;  %v321_v46 = vpop.f32.mrb[3].mxu1  ;;  %v984_v47 = vadd.f32 %v327_v42, %v863_v5 }
 0x1bf   :  { %v322_v48 = vadd.f32 %v978_v40, %v321_v46  ;;  %v988_v49 = vadd.f32 %v319_v30, %v851_v2 }
 0x1c0   :  { %v403_v50 = vsel %vm74_vm0, %v984_v47, 0.0  ;;  %v993_v51 = vadd.f32 %v330_v45, %v868_v6 }
 0x1c1   :  { %404 = vadd.xlane.f32.xlu1 %v403_v50  ;;  %v397_v52 = vsel %vm74_vm0, %v988_v49, 0.0  ;;  %v998_v53 = vadd.f32 %v322_v48, %v856_v3 }
 0x1c2   :  { %398 = vadd.xlane.f32.xlu0 %v397_v52  ;;  %v406_v2 = vsel %vm74_vm0, %v993_v51, 0.0 }
 0x1c3   :  { %v754_v5 = vpop.f32.mrb[4].mxu1  ;;  %v400_v57 = vsel %vm74_vm0, %v998_v53, 0.0 }
 0x1c4   :  { %v343_v54 = vadd.f32 %v754_v5, %v978_v40  ;;  %v334_v55 = vpop.f32.mrb[5].mxu1 }
 0x1c5   :  { %v335_v56 = vadd.f32 %v978_v40, %v334_v55  ;;  %407 = vadd.xlane.f32.xlu1 %v406_v2  ;;  %v755_v6 = vpop.f32.mrb[6].mxu1 }
 0x1c6   :  { %v346_v58 = vadd.f32 %v755_v6, %v978_v40  ;;  %v337_v59 = vpop.f32.mrb[7].mxu1  ;;  %401 = vadd.xlane.f32.xlu0 %v400_v57  ;;  %v1008_v3 = vadd.f32 %v343_v54, %v896_v13 }
 0x1c7   :  { %v338_v60 = vadd.f32 %v978_v40, %v337_v59  ;;  %v1017_v63 = vadd.f32 %v335_v56, %v873_v7 }
 0x1c8   :  { %v415_v61 = vsel %vm74_vm0, %v1008_v3, 0.0  ;;  %v1014_v62 = vadd.f32 %v346_v58, %v901_v14 }
 0x1c9   :  { %v1022_v1 = vadd.f32 %v338_v60, %v878_v8  ;;  %v409_v14 = vsel %vm74_vm0, %v1017_v63, 0.0 }
 0x1ca   :  { %416 = vadd.xlane.f32.xlu0 %v415_v61  ;;  %v418_v0 = vsel %vm74_vm0, %v1014_v62, 0.0 }
 0x1cb   :  { %419 = vadd.xlane.f32.xlu1 %v418_v0  ;;  %v758_v13 = vpop.f32.mrb[8].mxu1  ;;  %v412_v17 = vsel %vm74_vm0, %v1022_v1, 0.0 }
 0x1cc   :  { %v359_v4 = vadd.f32 %v758_v13, %v978_v40  ;;  %v350_v9 = vpop.f32.mrb[9].mxu1 }
 0x1cd   :  { %v351_v10 = vadd.f32 %v978_v40, %v350_v9  ;;  %v759_v11 = vpop.f32.mrb[10].mxu1 }
 0x1ce   :  { %v362_v7 = vadd.f32 %v759_v11, %v978_v40  ;;  %v353_v12 = vpop.f32.mrb[11].mxu1  ;;  %410 = vadd.xlane.f32.xlu0 %v409_v14  ;;  %v1032_v8 = vadd.f32 %v359_v4, %v922_v19 }
 0x1cf   :  { %v354_v18 = vadd.f32 %v978_v40, %v353_v12  ;;  %413 = vadd.xlane.f32.xlu1 %v412_v17  ;;  %v1041_v27 = vadd.f32 %v351_v10, %v906_v15 }
 0x1d0   :  { %v427_v23 = vsel %vm74_vm0, %v1032_v8, 0.0  ;;  %v1038_v24 = vadd.f32 %v362_v7, %v927_v20 }
 0x1d1   :  { %v1046_v29 = vadd.f32 %v354_v18, %v911_v16  ;;  %v421_v20 = vsel %vm74_vm0, %v1041_v27, 0.0 }
 0x1d2   :  { %428 = vadd.xlane.f32.xlu0 %v427_v23  ;;  %v430_v28 = vsel %vm74_vm0, %v1038_v24, 0.0 }
 0x1d3   :  { %v762_v19 = vpop.f32.mrb[12].mxu1  ;;  %431 = vadd.xlane.f32.xlu1 %v430_v28  ;;  %v424_v35 = vsel %vm74_vm0, %v1046_v29, 0.0 }
 0x1d4   :  { %v366_v31 = vpop.f32.mrb[13].mxu1  ;;  %v375_v32 = vadd.f32 %v762_v19, %v978_v40 }
 0x1d5   :  { %v367_v33 = vadd.f32 %v978_v40, %v366_v31  ;;  %v763_v34 = vpop.f32.mrb[14].mxu1 }
 0x1d6   :  { %v369_v15 = vpop.f32.mrb[15].mxu1  ;;  %422 = vadd.xlane.f32.xlu0 %v421_v20  ;;  %v378_v36 = vadd.f32 %v763_v34, %v978_v40  ;;  %v1065_v41 = vadd.f32 %v375_v32, %v948_v25 }
 0x1d7   :  { %v370_v16 = vadd.f32 %v978_v40, %v369_v15  ;;  %425 = vadd.xlane.f32.xlu1 %v424_v35  ;;  %v1057_v37 = vadd.f32 %v367_v33, %v932_v21 }
 0x1d8   :  { %v1070_v43 = vadd.f32 %v378_v36, %v953_v26  ;;  %v439_v21 = vsel %vm74_vm0, %v1065_v41, 0.0 }
 0x1d9   :  { %v433_v38 = vsel %vm74_vm0, %v1057_v37, 0.0  ;;  %v1062_v39 = vadd.f32 %v370_v16, %v937_v22 }
 0x1da   :  { %434 = vadd.xlane.f32.xlu0 %v433_v38  ;;  %v442_v40 = vsel %vm74_vm0, %v1070_v43, 0.0 }
 0x1db   :  { %v436_v42 = vsel %vm74_vm0, %v1062_v39, 0.0 }
 0x1dc   :  { %437 = vadd.xlane.f32.xlu1 %v436_v42 }
 0x1de   :  { %440 = vadd.xlane.f32.xlu0 %v439_v21 }
 0x1e0   :  { %443 = vadd.xlane.f32.xlu1 %v442_v40 }
 0x24e   :  { %v405_v22 = vpop.xlane.xlu1 %404 }
 0x24f   :  { %v448_v30 = vmul.f32 0.03125, %v405_v22  ;;  %v399_v25 = vpop.xlane.xlu0 %398 }
 0x250   :  { %v446_v44 = vmul.f32 0.03125, %v399_v25 }
 0x251   :  { %v1077_v45 = vsub.f32 %v984_v47, %v448_v30 }
 0x252   :  { %v1080_v46 = vsub.f32 %v988_v49, %v446_v44  ;;  %v408_v26 = vpop.xlane.xlu1 %407 }
 0x253   :  { %v449_v48 = vmul.f32 0.03125, %v408_v26  ;;  %v402_v50 = vpop.xlane.xlu0 %401  ;;  %v480_v52 = vmul.f32 %v1077_v45, %v1077_v45 }
 0x254   :  { %v447_v5 = vmul.f32 0.03125, %v402_v50  ;;  %v478_v2 = vmul.f32 %v1080_v46, %v1080_v46 }
 0x255   :  { %v1085_v54 = vsub.f32 %v993_v51, %v449_v48  ;;  %v500_v55 = vsel %vm74_vm0, %v480_v52, 0.0 }
 0x256   :  { %v1091_v47 = vsub.f32 %v998_v53, %v447_v5  ;;  %501 = vadd.xlane.f32.xlu0 %v500_v55  ;;  %v494_v51 = vsel %vm74_vm0, %v478_v2, 0.0 }
 0x257   :  { %v417_v49 = vpop.xlane.xlu0 %416  ;;  %v481_v56 = vmul.f32 %v1085_v54, %v1085_v54 }
 0x258   :  { %v452_v6 = vmul.f32 0.03125, %v417_v49  ;;  %v420_v57 = vpop.xlane.xlu1 %419  ;;  %v479_v60 = vmul.f32 %v1091_v47, %v1091_v47 }
 0x259   :  { %v453_v58 = vmul.f32 0.03125, %v420_v57  ;;  %v503_v59 = vsel %vm74_vm0, %v481_v56, 0.0 }
 0x25a   :  { %v1100_v61 = vsub.f32 %v1008_v3, %v452_v6  ;;  %504 = vadd.xlane.f32.xlu1 %v503_v59  ;;  %495 = vadd.xlane.f32.xlu0 %v494_v51  ;;  %v497_v11 = vsel %vm74_vm0, %v479_v60, 0.0 }
 0x25b   :  { %v1103_v53 = vsub.f32 %v1014_v62, %v453_v58  ;;  %v411_v0 = vpop.xlane.xlu0 %410 }
 0x25c   :  { %v450_v13 = vmul.f32 0.03125, %v411_v0  ;;  %v414_v4 = vpop.xlane.xlu1 %413  ;;  %v484_v9 = vmul.f32 %v1100_v61, %v1100_v61 }
 0x25d   :  { %v451_v10 = vmul.f32 0.03125, %v414_v4  ;;  %v485_v14 = vmul.f32 %v1103_v53, %v1103_v53 }
 0x25e   :  { %v1111_v3 = vsub.f32 %v1017_v63, %v450_v13  ;;  %498 = vadd.xlane.f32.xlu1 %v497_v11  ;;  %v512_v7 = vsel %vm74_vm0, %v484_v9, 0.0 }
 0x25f   :  { %v1115_v62 = vsub.f32 %v1022_v1, %v451_v10  ;;  %513 = vadd.xlane.f32.xlu0 %v512_v7  ;;  %v429_v12 = vpop.xlane.xlu0 %428  ;;  %v515_v19 = vsel %vm74_vm0, %v485_v14, 0.0 }
 0x260   :  { %v456_v17 = vmul.f32 0.03125, %v429_v12  ;;  %v432_v18 = vpop.xlane.xlu1 %431  ;;  %v482_v23 = vmul.f32 %v1111_v3, %v1111_v3 }
 0x261   :  { %v457_v28 = vmul.f32 0.03125, %v432_v18  ;;  %v483_v63 = vmul.f32 %v1115_v62, %v1115_v62 }
 0x262   :  { %v1123_v31 = vsub.f32 %v1032_v8, %v456_v17  ;;  %516 = vadd.xlane.f32.xlu1 %v515_v19  ;;  %v506_v1 = vsel %vm74_vm0, %v482_v23, 0.0 }
 0x263   :  { %v1127_v32 = vsub.f32 %v1038_v24, %v457_v28  ;;  %507 = vadd.xlane.f32.xlu0 %v506_v1  ;;  %v423_v33 = vpop.xlane.xlu0 %422  ;;  %v509_v36 = vsel %vm74_vm0, %v483_v63, 0.0 }
 0x264   :  { %v454_v34 = vmul.f32 0.03125, %v423_v33  ;;  %v426_v20 = vpop.xlane.xlu1 %425  ;;  %v488_v15 = vmul.f32 %v1123_v31, %v1123_v31 }
 0x265   :  { %v455_v35 = vmul.f32 0.03125, %v426_v20  ;;  %v489_v8 = vmul.f32 %v1127_v32, %v1127_v32 }
 0x266   :  { %v1135_v16 = vsub.f32 %v1041_v27, %v454_v34  ;;  %510 = vadd.xlane.f32.xlu1 %v509_v36  ;;  %v524_v24 = vsel %vm74_vm0, %v488_v15, 0.0  ;;  %v1175_v34 = vld [vmem:[%s1299_s5] ss:$0 sm:$0xff] }
 0x267   :  { %v1139_v38 = vsub.f32 %v1046_v29, %v455_v35  ;;  %525 = vadd.xlane.f32.xlu0 %v524_v24  ;;  %v435_v42 = vpop.xlane.xlu0 %434  ;;  %v527_v30 = vsel %vm74_vm0, %v489_v8, 0.0  ;;  %v1181_v8 = vld [vmem:[%s1300_s6] ss:$0 sm:$0xff] }
 0x268   :  { %v458_v21 = vmul.f32 0.03125, %v435_v42  ;;  %v486_v40 = vmul.f32 %v1135_v16, %v1135_v16 }
 0x269   :  { %v438_v22 = vpop.xlane.xlu1 %437  ;;  %v487_v25 = vmul.f32 %v1139_v38, %v1139_v38 }
 0x26a   :  { %v1147_v27 = vsub.f32 %v1057_v37, %v458_v21  ;;  %v459_v44 = vmul.f32 0.03125, %v438_v22  ;;  %528 = vadd.xlane.f32.xlu1 %v527_v30  ;;  %v518_v29 = vsel %vm74_vm0, %v486_v40, 0.0 }
 0x26b   :  { %519 = vadd.xlane.f32.xlu0 %v518_v29  ;;  %v441_v26 = vpop.xlane.xlu0 %440  ;;  %v521_v55 = vsel %vm74_vm0, %v487_v25, 0.0 }
 0x26c   :  { %v1151_v48 = vsub.f32 %v1062_v39, %v459_v44  ;;  %v460_v50 = vmul.f32 0.03125, %v441_v26  ;;  %v490_v52 = vmul.f32 %v1147_v27, %v1147_v27 }
 0x26d   :  { %v444_v5 = vpop.xlane.xlu1 %443 }
 0x26e   :  { %v1157_v2 = vsub.f32 %v1065_v41, %v460_v50  ;;  %v461_v37 = vmul.f32 0.03125, %v444_v5  ;;  %522 = vadd.xlane.f32.xlu1 %v521_v55  ;;  %v530_v49 = vsel %vm74_vm0, %v490_v52, 0.0  ;;  %v491_v56 = vmul.f32 %v1151_v48, %v1151_v48 }
 0x26f   :  { %531 = vadd.xlane.f32.xlu0 %v530_v49 }
 0x270   :  { %v1163_v39 = vsub.f32 %v1070_v43, %v461_v37  ;;  %v533_v6 = vsel %vm74_vm0, %v491_v56, 0.0  ;;  %v492_v57 = vmul.f32 %v1157_v2, %v1157_v2 }
 0x272   :  { %534 = vadd.xlane.f32.xlu1 %v533_v6  ;;  %v536_v41 = vsel %vm74_vm0, %v492_v57, 0.0  ;;  %v493_v58 = vmul.f32 %v1163_v39, %v1163_v39 }
 0x273   :  { %537 = vadd.xlane.f32.xlu0 %v536_v41 }
 0x274   :  { %v539_v59 = vsel %vm74_vm0, %v493_v58, 0.0 }
 0x276   :  { %540 = vadd.xlane.f32.xlu1 %v539_v59 }
 0x2e3   :  { %v502_v51 = vpop.xlane.xlu0 %501 }
 0x2e4   :  { %v544_v60 = vmul.f32 0.03125, %v502_v51 }
 0x2e6   :  { %v560_v0 = vadd.f32 1e-05, %v544_v60 }
 0x2e7   :  { %v505_v43 = vpop.xlane.xlu1 %504  ;;  %v496_v13 = vpop.xlane.xlu0 %495 }
 0x2e8   :  { %770 = vrsqrt.f32 %v560_v0  ;;  %v545_v4 = vmul.f32 0.03125, %v505_v43  ;;  %v542_v9 = vmul.f32 0.03125, %v496_v13 }
 0x2ea   :  { %v561_v10 = vadd.f32 1e-05, %v545_v4  ;;  %v558_v11 = vadd.f32 1e-05, %v542_v9 }
 0x2eb   :  { %v499_v14 = vpop.xlane.xlu1 %498 }
 0x2ec   :  { %772 = vrsqrt.f32 %v561_v10  ;;  %v543_v7 = vmul.f32 0.03125, %v499_v14  ;;  %v514_v12 = vpop.xlane.xlu0 %513 }
 0x2ed   :  { %774 = vrsqrt.f32 %v558_v11  ;;  %v548_v17 = vmul.f32 0.03125, %v514_v12 }
 0x2ee   :  { %v559_v18 = vadd.f32 1e-05, %v543_v7 }
 0x2ef   :  { %v564_v23 = vadd.f32 1e-05, %v548_v17  ;;  %v517_v28 = vpop.xlane.xlu1 %516 }
 0x2f0   :  { %776 = vrsqrt.f32 %v559_v18  ;;  %v549_v19 = vmul.f32 0.03125, %v517_v28  ;;  %v508_v63 = vpop.xlane.xlu0 %507 }
 0x2f1   :  { %778 = vrsqrt.f32 %v564_v23  ;;  %v546_v1 = vmul.f32 0.03125, %v508_v63 }
 0x2f2   :  { %v771_v33 = vpop.eup %770  ;;  %v565_v20 = vadd.f32 1e-05, %v549_v19 }
 0x2f3   :  { %v592_v15 = vmul.f32 %v771_v33, %v1077_v45  ;;  %v562_v35 = vadd.f32 1e-05, %v546_v1  ;;  %v511_v36 = vpop.xlane.xlu1 %510 }
 0x2f4   :  { %780 = vrsqrt.f32 %v565_v20  ;;  %v547_v24 = vmul.f32 0.03125, %v511_v36  ;;  %v526_v42 = vpop.xlane.xlu0 %525 }
 0x2f5   :  { %v615_v21 = vmul.f32 %v1175_v34, %v592_v15  ;;  %782 = vrsqrt.f32 %v562_v35  ;;  %v552_v40 = vmul.f32 0.03125, %v526_v42 }
 0x2f6   :  { %v773_v22 = vpop.eup %772  ;;  %v563_v30 = vadd.f32 1e-05, %v547_v24 }
 0x2f7   :  { %v775_v25 = vpop.eup %774  ;;  %v638_v44 = vadd.f32 %v1181_v8, %v615_v21  ;;  %v593_v45 = vmul.f32 %v773_v22, %v1085_v54  ;;  %v568_v29 = vadd.f32 1e-05, %v552_v40  ;;  %v529_v26 = vpop.xlane.xlu1 %528 }
 0x2f8   :  { %v590_v50 = vmul.f32 %v775_v25, %v1080_v46  ;;  %784 = vrsqrt.f32 %v563_v30  ;;  %v553_v52 = vmul.f32 0.03125, %v529_v26  ;;  %v520_v5 = vpop.xlane.xlu0 %519 }
 0x2f9   :  { %654 = vst.msk [vmem:[%s1301_s7 + $0x10] sm:$0xff] %vm74_vm0, %v638_v44  ;;  %v616_v55 = vmul.f32 %v1175_v34, %v593_v45  ;;  %786 = vrsqrt.f32 %v568_v29  ;;  %v550_v37 = vmul.f32 0.03125, %v520_v5 }
 0x2fa   :  { %v777_v49 = vpop.eup %776  ;;  %v613_v56 = vmul.f32 %v1175_v34, %v590_v50  ;;  %v569_v54 = vadd.f32 1e-05, %v553_v52 }
 0x2fb   :  { %v779_v6 = vpop.eup %778  ;;  %v639_v57 = vadd.f32 %v1181_v8, %v616_v55  ;;  %v591_v46 = vmul.f32 %v777_v49, %v1091_v47  ;;  %v566_v41 = vadd.f32 1e-05, %v550_v37  ;;  %v523_v58 = vpop.xlane.xlu1 %522 }
 0x2fc   :  { %v636_v59 = vadd.f32 %v1181_v8, %v613_v56  ;;  %v596_v51 = vmul.f32 %v779_v6, %v1100_v61  ;;  %788 = vrsqrt.f32 %v569_v54  ;;  %v551_v60 = vmul.f32 0.03125, %v523_v58  ;;  %v532_v0 = vpop.xlane.xlu0 %531 }
 0x2fd   :  { %655 = vst.msk [vmem:[%s1301_s7 + $0x18] sm:$0xff] %vm74_vm0, %v639_v57  ;;  %v614_v43 = vmul.f32 %v1175_v34, %v591_v46  ;;  %790 = vrsqrt.f32 %v566_v41  ;;  %v554_v13 = vmul.f32 0.03125, %v532_v0 }
 0x2fe   :  { %v781_v4 = vpop.eup %780  ;;  %652 = vst.msk [vmem:[%s1301_s7] sm:$0xff] %vm74_vm0, %v636_v59  ;;  %v619_v47 = vmul.f32 %v1175_v34, %v596_v51  ;;  %v567_v61 = vadd.f32 1e-05, %v551_v60 }
 0x2ff   :  { %v783_v9 = vpop.eup %782  ;;  %v637_v10 = vadd.f32 %v1181_v8, %v614_v43  ;;  %v597_v11 = vmul.f32 %v781_v4, %v1103_v53  ;;  %v570_v14 = vadd.f32 1e-05, %v554_v13  ;;  %v535_v7 = vpop.xlane.xlu1 %534 }
 0x300   :  { %v642_v12 = vadd.f32 %v1181_v8, %v619_v47  ;;  %v594_v17 = vmul.f32 %v783_v9, %v1111_v3  ;;  %792 = vrsqrt.f32 %v567_v61  ;;  %v555_v18 = vmul.f32 0.03125, %v535_v7  ;;  %v538_v23 = vpop.xlane.xlu0 %537 }
 0x301   :  { %653 = vst.msk [vmem:[%s1301_s7 + $0x8] sm:$0xff] %vm74_vm0, %v637_v10  ;;  %v620_v28 = vmul.f32 %v1175_v34, %v597_v11  ;;  %794 = vrsqrt.f32 %v570_v14  ;;  %v556_v19 = vmul.f32 0.03125, %v538_v23 }
 0x302   :  { %v785_v63 = vpop.eup %784  ;;  %658 = vst.msk [vmem:[%s1301_s7 + $0x30] sm:$0xff] %vm74_vm0, %v642_v12  ;;  %v617_v53 = vmul.f32 %v1175_v34, %v594_v17  ;;  %v571_v3 = vadd.f32 1e-05, %v555_v18 }
 0x303   :  { %v787_v1 = vpop.eup %786  ;;  %v643_v33 = vadd.f32 %v1181_v8, %v620_v28  ;;  %v595_v20 = vmul.f32 %v785_v63, %v1115_v62  ;;  %v572_v15 = vadd.f32 1e-05, %v556_v19  ;;  %v541_v35 = vpop.xlane.xlu1 %540 }
 0x304   :  { %v640_v36 = vadd.f32 %v1181_v8, %v617_v53  ;;  %v600_v24 = vmul.f32 %v787_v1, %v1123_v31  ;;  %796 = vrsqrt.f32 %v571_v3  ;;  %v557_v42 = vmul.f32 0.03125, %v541_v35 }
 0x305   :  { %659 = vst.msk [vmem:[%s1301_s7 + $0x38] sm:$0xff] %vm74_vm0, %v643_v33  ;;  %v618_v21 = vmul.f32 %v1175_v34, %v595_v20  ;;  %798 = vrsqrt.f32 %v572_v15 }
 0x306   :  { %v789_v40 = vpop.eup %788  ;;  %656 = vst.msk [vmem:[%s1301_s7 + $0x20] sm:$0xff] %vm74_vm0, %v640_v36  ;;  %v623_v62 = vmul.f32 %v1175_v34, %v600_v24  ;;  %v573_v22 = vadd.f32 1e-05, %v557_v42 }
 0x307   :  { %v791_v31 = vpop.eup %790  ;;  %v641_v30 = vadd.f32 %v1181_v8, %v618_v21  ;;  %v601_v25 = vmul.f32 %v789_v40, %v1127_v32 }
 0x308   :  { %v646_v44 = vadd.f32 %v1181_v8, %v623_v62  ;;  %v598_v45 = vmul.f32 %v791_v31, %v1135_v16  ;;  %800 = vrsqrt.f32 %v573_v22 }
 0x309   :  { %657 = vst.msk [vmem:[%s1301_s7 + $0x28] sm:$0xff] %vm74_vm0, %v641_v30  ;;  %v624_v29 = vmul.f32 %v1175_v34, %v601_v25 }
 0x30a   :  { %v793_v26 = vpop.eup %792  ;;  %662 = vst.msk [vmem:[%s1301_s7 + $0x50] sm:$0xff] %vm74_vm0, %v646_v44  ;;  %v621_v32 = vmul.f32 %v1175_v34, %v598_v45 }
 0x30b   :  { %v795_v50 = vpop.eup %794  ;;  %v647_v52 = vadd.f32 %v1181_v8, %v624_v29  ;;  %v599_v16 = vmul.f32 %v793_v26, %v1139_v38 }
 0x30c   :  { %v644_v5 = vadd.f32 %v1181_v8, %v621_v32  ;;  %v602_v55 = vmul.f32 %v795_v50, %v1147_v27 }
 0x30d   :  { %663 = vst.msk [vmem:[%s1301_s7 + $0x58] sm:$0xff] %vm74_vm0, %v647_v52  ;;  %v622_v37 = vmul.f32 %v1175_v34, %v599_v16 }
 0x30e   :  { %v797_v49 = vpop.eup %796  ;;  %660 = vst.msk [vmem:[%s1301_s7 + $0x40] sm:$0xff] %vm74_vm0, %v644_v5  ;;  %v625_v56 = vmul.f32 %v1175_v34, %v602_v55 }
 0x30f   :  { %v799_v38 = vpop.eup %798  ;;  %v645_v54 = vadd.f32 %v1181_v8, %v622_v37  ;;  %v603_v27 = vmul.f32 %v797_v49, %v1151_v48 }
 0x310   :  { %v648_v6 = vadd.f32 %v1181_v8, %v625_v56  ;;  %v604_v57 = vmul.f32 %v799_v38, %v1157_v2 }
 0x311   :  { %661 = vst.msk [vmem:[%s1301_s7 + $0x48] sm:$0xff] %vm74_vm0, %v645_v54  ;;  %v626_v46 = vmul.f32 %v1175_v34, %v603_v27 }
 0x312   :  { %v801_v41 = vpop.eup %800  ;;  %664 = vst.msk [vmem:[%s1301_s7 + $0x60] sm:$0xff] %vm74_vm0, %v648_v6  ;;  %v627_v58 = vmul.f32 %v1175_v34, %v604_v57 }
 0x313   :  { %v649_v48 = vadd.f32 %v1181_v8, %v626_v46  ;;  %v605_v59 = vmul.f32 %v801_v41, %v1163_v39 }
 0x314   :  { %v650_v2 = vadd.f32 %v1181_v8, %v627_v58 }
 0x315   :  { %665 = vst.msk [vmem:[%s1301_s7 + $0x68] sm:$0xff] %vm74_vm0, %v649_v48  ;;  %v628_v51 = vmul.f32 %v1175_v34, %v605_v59 }
 0x316   :  { %666 = vst.msk [vmem:[%s1301_s7 + $0x70] sm:$0xff] %vm74_vm0, %v650_v2 }
 0x317   :  { %v651_v60 = vadd.f32 %v1181_v8, %v628_v51 }
 0x319   :  { %667 = vst.msk [vmem:[%s1301_s7 + $0x78] sm:$0xff] %vm74_vm0, %v651_v60 }

</bundles_post_ra>
